<compile_context>
chip_gen: v5e
topology: v5e:2x2
jax: 0.10.0
libtpu: 0.0.40
codegen_flags: <defaults>
</compile_context>

<pallas_src>
import jax
import jax.numpy as jnp
from jax.experimental import pallas as pl
from jax.experimental.pallas import tpu as pltpu

INPUT_SIZE = 6
D_MODEL = 64
NUM_HEADS = 8
HEAD_DIM = D_MODEL // NUM_HEADS
NUM_LAYERS = 4
DIM_FF = 2048            # nn.TransformerEncoderLayer default
OUTPUT_SIZE = 6
LN_EPS = 1e-5            # nn.LayerNorm default
ATTN_SCALE = float(HEAD_DIM) ** -0.5
NEG_INF = -1e30


def _layernorm(x, w, b):
    mean = jnp.mean(x, axis=-1, keepdims=True)
    var = jnp.mean((x - mean) ** 2, axis=-1, keepdims=True)
    return (x - mean) * jax.lax.rsqrt(var + LN_EPS) * w + b


def _lotto_kernel(x_ref, emb_w_ref, emb_b_ref,
                  wq_ref, wk_ref, wv_ref, bq_ref, bk_ref, bv_ref,
                  out_w_ref, out_b_ref,
                  lin1_w_ref, lin1_b_ref, lin2_w_ref, lin2_b_ref,
                  n1_w_ref, n1_b_ref, n2_w_ref, n2_b_ref,
                  fc_w_ref, fc_b_ref,
                  expand_ref, merge_ref, hmask_ref, amask_ref, sel_ref,
                  o_ref, h_ref):
    f32 = jnp.float32
    l = pl.program_id(0)

    # ---- embedding: nn.Linear(input_size, d_model), first grid step only ---
    @pl.when(l == 0)
    def _():
        h_ref[...] = (jnp.dot(x_ref[...], emb_w_ref[...],
                              preferred_element_type=f32) + emb_b_ref[...])

    h = h_ref[...]                                          # (M_pad, D)

    # ---- multi-head self attention, all (batch, head) pairs at once --------
    q = jnp.dot(h, wq_ref[...], preferred_element_type=f32) + bq_ref[...]
    k = jnp.dot(h, wk_ref[...], preferred_element_type=f32) + bk_ref[...]
    v = jnp.dot(h, wv_ref[...], preferred_element_type=f32) + bv_ref[...]
    q = q * f32(ATTN_SCALE)                                 # scale folded once

    expand = expand_ref[...]                                # (R_pad, M_pad)
    hmask = hmask_ref[...]                                  # (R_pad, D)

    # one row per (batch, head, query position); only that head's lanes live
    q_exp = jnp.dot(expand, q, preferred_element_type=f32) * hmask      # (R_pad, D)
    # scores against every (padded) token; contraction picks the head's lanes
    s = jax.lax.dot_general(q_exp, k, (((1,), (1,)), ((), ())),
                            preferred_element_type=f32)                 # (R_pad, M_pad)
    s = s + amask_ref[...]                 # mask other batches + padding columns
    m = jnp.max(s, axis=-1, keepdims=True)   # exact per-(batch,head,query) max
    e = jnp.exp(s - m)
    z = jnp.sum(e, axis=-1, keepdims=True)   # >= 1, never 0
    p = e / z
    ctx = jnp.dot(p, v, preferred_element_type=f32) * hmask             # (R_pad, D)
    attn = jnp.dot(merge_ref[...], ctx, preferred_element_type=f32)     # (M_pad, D)
    attn = jnp.dot(attn, out_w_ref[...], preferred_element_type=f32) + out_b_ref[...]

    # residual + norm1 (dropout1 identity at inference)
    h = _layernorm(h + attn, n1_w_ref[...], n1_b_ref[...])

    # ---- feed-forward: linear1 -> relu -> linear2 (bf16 weights, f32 acc) ---
    ff = jnp.dot(h.astype(jnp.bfloat16), lin1_w_ref[...],
                 preferred_element_type=f32) + lin1_b_ref[...]
    ff = jnp.maximum(ff, 0.0)
    ff = jnp.dot(ff.astype(jnp.bfloat16), lin2_w_ref[...],
                 preferred_element_type=f32) + lin2_b_ref[...]

    # residual + norm2 (dropout2 identity at inference)
    h = _layernorm(h + ff, n2_w_ref[...], n2_b_ref[...])
    h_ref[...] = h

    # ---- x = x[:, -1, :]; self.fc(x) — last-token gather via selection matmul
    @pl.when(l == NUM_LAYERS - 1)
    def _():
        last = jnp.dot(sel_ref[...], h, preferred_element_type=f32)      # (B, D)
        o_ref[...] = (jnp.dot(last, fc_w_ref[...],
                              preferred_element_type=f32) + fc_b_ref[...])


def init_params(key):
    """Deterministic synthetic parameters (shapes match the PyTorch module)."""
    keys = jax.random.split(key, 12)
    n = lambda k, shape, s=0.05: (s * jax.random.normal(k, shape)).astype(jnp.float32)
    return {
        # already transposed for (M,K)@(K,N) matmuls inside the kernel
        "emb_w":  n(keys[0], (INPUT_SIZE, D_MODEL)),
        "emb_b":  n(keys[1], (1, D_MODEL)),
        "in_w":   n(keys[2], (NUM_LAYERS, D_MODEL, 3 * D_MODEL)),   # in_proj (q|k|v)
        "in_b":   n(keys[3], (NUM_LAYERS, 1, 3 * D_MODEL)),
        "out_w":  n(keys[4], (NUM_LAYERS, D_MODEL, D_MODEL)),
        "out_b":  n(keys[5], (NUM_LAYERS, 1, D_MODEL)),
        "lin1_w": n(keys[6], (NUM_LAYERS, D_MODEL, DIM_FF)),
        "lin1_b": n(keys[7], (NUM_LAYERS, 1, DIM_FF)),
        "lin2_w": n(keys[8], (NUM_LAYERS, DIM_FF, D_MODEL)),
        "lin2_b": n(keys[9], (NUM_LAYERS, 1, D_MODEL)),
        "n1_w":   jnp.ones((NUM_LAYERS, 1, D_MODEL), jnp.float32),
        "n1_b":   jnp.zeros((NUM_LAYERS, 1, D_MODEL), jnp.float32),
        "n2_w":   jnp.ones((NUM_LAYERS, 1, D_MODEL), jnp.float32),
        "n2_b":   jnp.zeros((NUM_LAYERS, 1, D_MODEL), jnp.float32),
        "fc_w":   n(keys[10], (D_MODEL, OUTPUT_SIZE)),
        "fc_b":   n(keys[11], (1, OUTPUT_SIZE)),
    }


def lotto_transformer_forward(params, x):
    """x: (B, S, INPUT_SIZE) float32, batch_first.  Returns (B, OUTPUT_SIZE)."""
    B, S, F = x.shape
    assert F == INPUT_SIZE
    M = B * S
    M_pad = ((M + 7) // 8) * 8                      # tokens rounded to 8 sublanes
    F_pad = ((F + 7) // 8) * 8                      # zero-pad contraction dim 6 -> 8
    x2d = jnp.pad(x.reshape(M, F).astype(jnp.float32),
                  ((0, M_pad - M), (0, F_pad - F)))
    emb_w = jnp.pad(params["emb_w"], ((0, F_pad - F), (0, 0)))

    # ---- precomputed attention helper matrices ------------------------------
    R = B * NUM_HEADS * S                           # one row per (batch, head, query)
    R_pad = ((R + 7) // 8) * 8
    r = jnp.arange(R_pad)
    rb = r // (NUM_HEADS * S)                       # batch of expanded row
    rh = (r // S) % NUM_HEADS                       # head of expanded row
    rj = r % S                                      # query position of expanded row
    valid_r = r < R
    m_idx = jnp.arange(M_pad)

    # expand[(b,h,j), b*S+j] = 1   (row gather of Q per head)
    expand = ((m_idx[None, :] == (rb * S + rj)[:, None]) & valid_r[:, None]
              ).astype(jnp.float32)                                 # (R_pad, M_pad)
    merge = expand.T                                                # (M_pad, R_pad)
    # head-lane mask: keep only head h's 8 lanes of d_model
    lane_head = jnp.arange(D_MODEL) // HEAD_DIM
    hmask = (lane_head[None, :] == rh[:, None]).astype(jnp.float32)  # (R_pad, D)
    # additive mask: a row may only attend to its own batch's real tokens
    col_ok = (m_idx[None, :] // S == rb[:, None]) & (m_idx[None, :] < M)
    col_ok = col_ok | (~valid_r[:, None])           # padded rows: keep softmax finite
    amask = jnp.where(col_ok, 0.0, NEG_INF).astype(jnp.float32)     # (R_pad, M_pad)
    # last-token selector for x[:, -1, :]
    sel = (m_idx[None, :] ==
           (jnp.arange(B) * S + (S - 1))[:, None]).astype(jnp.float32)  # (B, M_pad)

    # split the packed in_proj into q/k/v (host side, avoids in-kernel lane slicing)
    D = D_MODEL
    wq, wk, wv = (params["in_w"][:, :, 0:D], params["in_w"][:, :, D:2 * D],
                  params["in_w"][:, :, 2 * D:3 * D])
    bq, bk, bv = (params["in_b"][:, :, 0:D], params["in_b"][:, :, D:2 * D],
                  params["in_b"][:, :, 2 * D:3 * D])

    # bf16 for the bandwidth-dominant FF weights (MXU-native, f32 accumulate)
    lin1_w = params["lin1_w"].astype(jnp.bfloat16)
    lin2_w = params["lin2_w"].astype(jnp.bfloat16)

    args = (
        x2d, emb_w, params["emb_b"],
        wq, wk, wv, bq, bk, bv,
        params["out_w"], params["out_b"],
        lin1_w, params["lin1_b"], lin2_w, params["lin2_b"],
        params["n1_w"], params["n1_b"], params["n2_w"], params["n2_b"],
        params["fc_w"], params["fc_b"],
        expand, merge, hmask, amask, sel,
    )

    def full_spec(a):   # whole (small) array resident every layer step
        return pl.BlockSpec(a.shape, lambda l: (0,) * a.ndim)

    def layer_spec(a):  # per-layer slice, pipelined across the layer grid
        return pl.BlockSpec((None,) + a.shape[1:], lambda l: (l, 0, 0))

    in_specs = [layer_spec(a) if a.ndim == 3 else full_spec(a) for a in args]

    flops = NUM_LAYERS * (
        2 * M_pad * D * (4 * D + 2 * DIM_FF)              # qkv + out proj + FF
        + 2 * R_pad * M_pad * D * 3                       # expand, scores, p@V
        + 2 * M_pad * R_pad * D                           # head merge
    ) + 2 * M_pad * F_pad * D + 2 * B * M_pad * D + 2 * B * D * OUTPUT_SIZE
    transcendentals = NUM_LAYERS * (R_pad * M_pad + 2 * M_pad)
    bytes_accessed = (sum(int(a.size) * a.dtype.itemsize for a in args)
                      + B * OUTPUT_SIZE * 4)

    return pl.pallas_call(
        _lotto_kernel,
        grid=(NUM_LAYERS,),
        in_specs=in_specs,
        out_specs=pl.BlockSpec((B, OUTPUT_SIZE), lambda l: (0, 0)),
        out_shape=jax.ShapeDtypeStruct((B, OUTPUT_SIZE), jnp.float32),
        scratch_shapes=[pltpu.VMEM((M_pad, D_MODEL), jnp.float32)],  # carried h
        compiler_params=pltpu.CompilerParams(
            dimension_semantics=("arbitrary",),
            vmem_limit_bytes=32 * 1024 * 1024),
        cost_estimate=pl.CostEstimate(
            flops=int(flops),
            transcendentals=int(transcendentals),
            bytes_accessed=int(bytes_accessed)),
    )(*args)


if __name__ == "__main__":
    key = jax.random.PRNGKey(0)
    k_x, k_p = jax.random.split(key)

    B, S = 2, 5   # the module is fed 5 past draws of 6 numbers each
    x = jax.random.uniform(k_x, (B, S, INPUT_SIZE), jnp.float32, 1.0, 45.0)
    params = init_params(k_p)

    out = lotto_transformer_forward(params, x)
    out = jax.block_until_ready(out)
    assert out.shape == (B, OUTPUT_SIZE) and out.dtype == jnp.float32
    assert bool(jnp.all(jnp.isfinite(out)))
    # TODO(synk): training-mode dropout is not implemented (inference/eval semantics).
    print("KERNEL_OK")
</pallas_src>

<mosaic_0001>
module attributes {stable_mosaic.version = 11 : i64} {
  func.func @_lotto_kernel(%arg0: i32, %arg1: memref<16x8xf32, #tpu.memory_space<vmem>>, %arg2: memref<8x64xf32, #tpu.memory_space<vmem>>, %arg3: memref<1x64xf32, #tpu.memory_space<vmem>>, %arg4: memref<1x64x64xf32, #tpu.memory_space<vmem>>, %arg5: memref<1x64x64xf32, #tpu.memory_space<vmem>>, %arg6: memref<1x64x64xf32, #tpu.memory_space<vmem>>, %arg7: memref<1x1x64xf32, #tpu.memory_space<vmem>>, %arg8: memref<1x1x64xf32, #tpu.memory_space<vmem>>, %arg9: memref<1x1x64xf32, #tpu.memory_space<vmem>>, %arg10: memref<1x64x64xf32, #tpu.memory_space<vmem>>, %arg11: memref<1x1x64xf32, #tpu.memory_space<vmem>>, %arg12: memref<1x64x2048xbf16, #tpu.memory_space<vmem>>, %arg13: memref<1x1x2048xf32, #tpu.memory_space<vmem>>, %arg14: memref<1x2048x64xbf16, #tpu.memory_space<vmem>>, %arg15: memref<1x1x64xf32, #tpu.memory_space<vmem>>, %arg16: memref<1x1x64xf32, #tpu.memory_space<vmem>>, %arg17: memref<1x1x64xf32, #tpu.memory_space<vmem>>, %arg18: memref<1x1x64xf32, #tpu.memory_space<vmem>>, %arg19: memref<1x1x64xf32, #tpu.memory_space<vmem>>, %arg20: memref<64x6xf32, #tpu.memory_space<vmem>>, %arg21: memref<1x6xf32, #tpu.memory_space<vmem>>, %arg22: memref<80x16xf32, #tpu.memory_space<vmem>>, %arg23: memref<16x80xf32, #tpu.memory_space<vmem>>, %arg24: memref<80x64xf32, #tpu.memory_space<vmem>>, %arg25: memref<80x16xf32, #tpu.memory_space<vmem>>, %arg26: memref<2x16xf32, #tpu.memory_space<vmem>>, %arg27: memref<2x6xf32, #tpu.memory_space<vmem>>, %arg28: memref<16x64xf32, #tpu.memory_space<vmem>>) attributes {dimension_semantics = [#tpu.dimension_semantics<arbitrary>], iteration_bounds = array<i64: 4>, scalar_prefetch = 0 : i64, scratch_operands = 1 : i64, tpu.core_type = #tpu.core_type<tc>, window_params = [{pipeline_mode = #tpu.pipeline_mode<synchronous>, transform_indices = @transform_0, window_bounds = array<i64: 16, 8>}, {pipeline_mode = #tpu.pipeline_mode<synchronous>, transform_indices = @transform_1, window_bounds = array<i64: 8, 64>}, {pipeline_mode = #tpu.pipeline_mode<synchronous>, transform_indices = @transform_2, window_bounds = array<i64: 1, 64>}, {transform_indices = @transform_3, window_bounds = array<i64: 1, 64, 64>}, {transform_indices = @transform_4, window_bounds = array<i64: 1, 64, 64>}, {transform_indices = @transform_5, window_bounds = array<i64: 1, 64, 64>}, {transform_indices = @transform_6, window_bounds = array<i64: 1, 1, 64>}, {transform_indices = @transform_7, window_bounds = array<i64: 1, 1, 64>}, {transform_indices = @transform_8, window_bounds = array<i64: 1, 1, 64>}, {transform_indices = @transform_9, window_bounds = array<i64: 1, 64, 64>}, {transform_indices = @transform_10, window_bounds = array<i64: 1, 1, 64>}, {transform_indices = @transform_11, window_bounds = array<i64: 1, 64, 2048>}, {transform_indices = @transform_12, window_bounds = array<i64: 1, 1, 2048>}, {transform_indices = @transform_13, window_bounds = array<i64: 1, 2048, 64>}, {transform_indices = @transform_14, window_bounds = array<i64: 1, 1, 64>}, {transform_indices = @transform_15, window_bounds = array<i64: 1, 1, 64>}, {transform_indices = @transform_16, window_bounds = array<i64: 1, 1, 64>}, {transform_indices = @transform_17, window_bounds = array<i64: 1, 1, 64>}, {transform_indices = @transform_18, window_bounds = array<i64: 1, 1, 64>}, {pipeline_mode = #tpu.pipeline_mode<synchronous>, transform_indices = @transform_19, window_bounds = array<i64: 64, 6>}, {pipeline_mode = #tpu.pipeline_mode<synchronous>, transform_indices = @transform_20, window_bounds = array<i64: 1, 6>}, {pipeline_mode = #tpu.pipeline_mode<synchronous>, transform_indices = @transform_21, window_bounds = array<i64: 80, 16>}, {pipeline_mode = #tpu.pipeline_mode<synchronous>, transform_indices = @transform_22, window_bounds = array<i64: 16, 80>}, {pipeline_mode = #tpu.pipeline_mode<synchronous>, transform_indices = @transform_23, window_bounds = array<i64: 80, 64>}, {pipeline_mode = #tpu.pipeline_mode<synchronous>, transform_indices = @transform_24, window_bounds = array<i64: 80, 16>}, {pipeline_mode = #tpu.pipeline_mode<synchronous>, transform_indices = @transform_25, window_bounds = array<i64: 2, 16>}, {pipeline_mode = #tpu.pipeline_mode<synchronous>, transform_indices = @transform_26, window_bounds = array<i64: 2, 6>}]} {
    %c0_i32 = arith.constant 0 : i32
    %0 = arith.cmpi eq, %arg0, %c0_i32 : i32
    %1 = arith.extui %0 : i1 to i32
    %c0_i32_0 = arith.constant 0 : i32
    %2 = arith.cmpi ne, %1, %c0_i32_0 : i32
    scf.if %2 {
      %c0_84 = arith.constant 0 : index
      %c0_85 = arith.constant 0 : index
      %130 = vector.load %arg1[%c0_84, %c0_85] : memref<16x8xf32, #tpu.memory_space<vmem>>, vector<16x8xf32>
      %c0_86 = arith.constant 0 : index
      %c0_87 = arith.constant 0 : index
      %131 = vector.load %arg2[%c0_86, %c0_87] : memref<8x64xf32, #tpu.memory_space<vmem>>, vector<8x64xf32>
      %cst_88 = arith.constant dense<0.000000e+00> : vector<16x64xf32>
      %132 = tpu.matmul %130, %131, %cst_88 {dimension_numbers = #tpu.dot_dimension_numbers<[1], [0], [0], [1], [0, 0, 1, 1], [], []>} : vector<16x8xf32>, vector<8x64xf32>, vector<16x64xf32> -> vector<16x64xf32>
      %c0_89 = arith.constant 0 : index
      %c0_90 = arith.constant 0 : index
      %133 = vector.load %arg3[%c0_89, %c0_90] : memref<1x64xf32, #tpu.memory_space<vmem>>, vector<1x64xf32>
      %134 = vector.broadcast %133 : vector<1x64xf32> to vector<16x64xf32>
      %135 = arith.addf %132, %134 : vector<16x64xf32>
      %c0_91 = arith.constant 0 : index
      %c0_92 = arith.constant 0 : index
      %136 = vector.load %arg28[%c0_91, %c0_92] : memref<16x64xf32, #tpu.memory_space<vmem>>, vector<16x64xf32>
      tpu.vector_store %arg28[%c0_91, %c0_92], %135 {strides = array<i32>} : memref<16x64xf32, #tpu.memory_space<vmem>>, vector<16x64xf32>,
    } else {
    }
    %c0 = arith.constant 0 : index
    %c0_1 = arith.constant 0 : index
    %3 = vector.load %arg28[%c0, %c0_1] : memref<16x64xf32, #tpu.memory_space<vmem>>, vector<16x64xf32>
    %c0_2 = arith.constant 0 : index
    %c0_3 = arith.constant 0 : index
    %c0_4 = arith.constant 0 : index
    %4 = vector.load %arg4[%c0_2, %c0_3, %c0_4] : memref<1x64x64xf32, #tpu.memory_space<vmem>>, vector<1x64x64xf32>
    %5 = vector.shape_cast %4 : vector<1x64x64xf32> to vector<64x64xf32>
    %cst = arith.constant dense<0.000000e+00> : vector<16x64xf32>
    %6 = tpu.matmul %3, %5, %cst {dimension_numbers = #tpu.dot_dimension_numbers<[1], [0], [0], [1], [0, 0, 1, 1], [], []>} : vector<16x64xf32>, vector<64x64xf32>, vector<16x64xf32> -> vector<16x64xf32>
    %c0_5 = arith.constant 0 : index
    %c0_6 = arith.constant 0 : index
    %c0_7 = arith.constant 0 : index
    %7 = vector.load %arg7[%c0_5, %c0_6, %c0_7] : memref<1x1x64xf32, #tpu.memory_space<vmem>>, vector<1x1x64xf32>
    %8 = vector.shape_cast %7 : vector<1x1x64xf32> to vector<1x64xf32>
    %9 = vector.broadcast %8 : vector<1x64xf32> to vector<16x64xf32>
    %10 = arith.addf %6, %9 : vector<16x64xf32>
    %c0_8 = arith.constant 0 : index
    %c0_9 = arith.constant 0 : index
    %c0_10 = arith.constant 0 : index
    %11 = vector.load %arg5[%c0_8, %c0_9, %c0_10] : memref<1x64x64xf32, #tpu.memory_space<vmem>>, vector<1x64x64xf32>
    %12 = vector.shape_cast %11 : vector<1x64x64xf32> to vector<64x64xf32>
    %cst_11 = arith.constant dense<0.000000e+00> : vector<16x64xf32>
    %13 = tpu.matmul %3, %12, %cst_11 {dimension_numbers = #tpu.dot_dimension_numbers<[1], [0], [0], [1], [0, 0, 1, 1], [], []>} : vector<16x64xf32>, vector<64x64xf32>, vector<16x64xf32> -> vector<16x64xf32>
    %c0_12 = arith.constant 0 : index
    %c0_13 = arith.constant 0 : index
    %c0_14 = arith.constant 0 : index
    %14 = vector.load %arg8[%c0_12, %c0_13, %c0_14] : memref<1x1x64xf32, #tpu.memory_space<vmem>>, vector<1x1x64xf32>
    %15 = vector.shape_cast %14 : vector<1x1x64xf32> to vector<1x64xf32>
    %16 = vector.broadcast %15 : vector<1x64xf32> to vector<16x64xf32>
    %17 = arith.addf %13, %16 : vector<16x64xf32>
    %c0_15 = arith.constant 0 : index
    %c0_16 = arith.constant 0 : index
    %c0_17 = arith.constant 0 : index
    %18 = vector.load %arg6[%c0_15, %c0_16, %c0_17] : memref<1x64x64xf32, #tpu.memory_space<vmem>>, vector<1x64x64xf32>
    %19 = vector.shape_cast %18 : vector<1x64x64xf32> to vector<64x64xf32>
    %cst_18 = arith.constant dense<0.000000e+00> : vector<16x64xf32>
    %20 = tpu.matmul %3, %19, %cst_18 {dimension_numbers = #tpu.dot_dimension_numbers<[1], [0], [0], [1], [0, 0, 1, 1], [], []>} : vector<16x64xf32>, vector<64x64xf32>, vector<16x64xf32> -> vector<16x64xf32>
    %c0_19 = arith.constant 0 : index
    %c0_20 = arith.constant 0 : index
    %c0_21 = arith.constant 0 : index
    %21 = vector.load %arg9[%c0_19, %c0_20, %c0_21] : memref<1x1x64xf32, #tpu.memory_space<vmem>>, vector<1x1x64xf32>
    %22 = vector.shape_cast %21 : vector<1x1x64xf32> to vector<1x64xf32>
    %23 = vector.broadcast %22 : vector<1x64xf32> to vector<16x64xf32>
    %24 = arith.addf %20, %23 : vector<16x64xf32>
    %cst_22 = arith.constant 0.353553385 : f32
    %25 = vector.broadcast %cst_22 : f32 to vector<16x64xf32>
    %26 = arith.mulf %10, %25 : vector<16x64xf32>
    %c0_23 = arith.constant 0 : index
    %c0_24 = arith.constant 0 : index
    %27 = vector.load %arg22[%c0_23, %c0_24] : memref<80x16xf32, #tpu.memory_space<vmem>>, vector<80x16xf32>
    %c0_25 = arith.constant 0 : index
    %c0_26 = arith.constant 0 : index
    %28 = vector.load %arg24[%c0_25, %c0_26] : memref<80x64xf32, #tpu.memory_space<vmem>>, vector<80x64xf32>
    %cst_27 = arith.constant dense<0.000000e+00> : vector<80x64xf32>
    %29 = tpu.matmul %27, %26, %cst_27 {dimension_numbers = #tpu.dot_dimension_numbers<[1], [0], [0], [1], [0, 0, 1, 1], [], []>} : vector<80x16xf32>, vector<16x64xf32>, vector<80x64xf32> -> vector<80x64xf32>
    %30 = arith.mulf %29, %28 : vector<80x64xf32>
    %cst_28 = arith.constant dense<0.000000e+00> : vector<80x16xf32>
    %31 = tpu.matmul %30, %17, %cst_28 {dimension_numbers = #tpu.dot_dimension_numbers<[1], [1], [0], [0], [0, 0, 1, 0], [], []>} : vector<80x64xf32>, vector<16x64xf32>, vector<80x16xf32> -> vector<80x16xf32>
    %c0_29 = arith.constant 0 : index
    %c0_30 = arith.constant 0 : index
    %32 = vector.load %arg25[%c0_29, %c0_30] : memref<80x16xf32, #tpu.memory_space<vmem>>, vector<80x16xf32>
    %33 = arith.addf %31, %32 : vector<80x16xf32>
    %cst_31 = arith.constant dense<0xFF800000> : vector<80xf32>
    %34 = vector.multi_reduction <maximumf>, %33, %cst_31 [1] : vector<80x16xf32> to vector<80xf32>
    %35 = vector.shape_cast %34 : vector<80xf32> to vector<80x1xf32>
    %36 = vector.broadcast %35 : vector<80x1xf32> to vector<80x16xf32>
    %37 = arith.subf %33, %36 : vector<80x16xf32>
    %38 = math.exp %37 : vector<80x16xf32>
    %cst_32 = arith.constant dense<0.000000e+00> : vector<80xf32>
    %39 = vector.multi_reduction <add>, %38, %cst_32 [1] : vector<80x16xf32> to vector<80xf32>
    %40 = vector.shape_cast %39 : vector<80xf32> to vector<80x1xf32>
    %41 = vector.broadcast %40 : vector<80x1xf32> to vector<80x16xf32>
    %42 = arith.divf %38, %41 : vector<80x16xf32>
    %cst_33 = arith.constant dense<0.000000e+00> : vector<80x64xf32>
    %43 = tpu.matmul %42, %24, %cst_33 {dimension_numbers = #tpu.dot_dimension_numbers<[1], [0], [0], [1], [0, 0, 1, 1], [], []>} : vector<80x16xf32>, vector<16x64xf32>, vector<80x64xf32> -> vector<80x64xf32>
    %44 = arith.mulf %43, %28 : vector<80x64xf32>
    %c0_34 = arith.constant 0 : index
    %c0_35 = arith.constant 0 : index
    %45 = vector.load %arg23[%c0_34, %c0_35] : memref<16x80xf32, #tpu.memory_space<vmem>>, vector<16x80xf32>
    %cst_36 = arith.constant dense<0.000000e+00> : vector<16x64xf32>
    %46 = tpu.matmul %45, %44, %cst_36 {dimension_numbers = #tpu.dot_dimension_numbers<[1], [0], [0], [1], [0, 0, 1, 1], [], []>} : vector<16x80xf32>, vector<80x64xf32>, vector<16x64xf32> -> vector<16x64xf32>
    %c0_37 = arith.constant 0 : index
    %c0_38 = arith.constant 0 : index
    %c0_39 = arith.constant 0 : index
    %47 = vector.load %arg10[%c0_37, %c0_38, %c0_39] : memref<1x64x64xf32, #tpu.memory_space<vmem>>, vector<1x64x64xf32>
    %48 = vector.shape_cast %47 : vector<1x64x64xf32> to vector<64x64xf32>
    %cst_40 = arith.constant dense<0.000000e+00> : vector<16x64xf32>
    %49 = tpu.matmul %46, %48, %cst_40 {dimension_numbers = #tpu.dot_dimension_numbers<[1], [0], [0], [1], [0, 0, 1, 1], [], []>} : vector<16x64xf32>, vector<64x64xf32>, vector<16x64xf32> -> vector<16x64xf32>
    %c0_41 = arith.constant 0 : index
    %c0_42 = arith.constant 0 : index
    %c0_43 = arith.constant 0 : index
    %50 = vector.load %arg11[%c0_41, %c0_42, %c0_43] : memref<1x1x64xf32, #tpu.memory_space<vmem>>, vector<1x1x64xf32>
    %51 = vector.shape_cast %50 : vector<1x1x64xf32> to vector<1x64xf32>
    %52 = vector.broadcast %51 : vector<1x64xf32> to vector<16x64xf32>
    %53 = arith.addf %49, %52 : vector<16x64xf32>
    %54 = arith.addf %3, %53 : vector<16x64xf32>
    %c0_44 = arith.constant 0 : index
    %c0_45 = arith.constant 0 : index
    %c0_46 = arith.constant 0 : index
    %55 = vector.load %arg16[%c0_44, %c0_45, %c0_46] : memref<1x1x64xf32, #tpu.memory_space<vmem>>, vector<1x1x64xf32>
    %56 = vector.shape_cast %55 : vector<1x1x64xf32> to vector<1x64xf32>
    %c0_47 = arith.constant 0 : index
    %c0_48 = arith.constant 0 : index
    %c0_49 = arith.constant 0 : index
    %57 = vector.load %arg17[%c0_47, %c0_48, %c0_49] : memref<1x1x64xf32, #tpu.memory_space<vmem>>, vector<1x1x64xf32>
    %58 = vector.shape_cast %57 : vector<1x1x64xf32> to vector<1x64xf32>
    %cst_50 = arith.constant dense<0.000000e+00> : vector<16xf32>
    %59 = vector.multi_reduction <add>, %54, %cst_50 [1] : vector<16x64xf32> to vector<16xf32>
    %60 = vector.shape_cast %59 : vector<16xf32> to vector<16x1xf32>
    %cst_51 = arith.constant 6.400000e+01 : f32
    %61 = vector.broadcast %cst_51 : f32 to vector<16x1xf32>
    %62 = arith.divf %60, %61 : vector<16x1xf32>
    %63 = vector.broadcast %62 : vector<16x1xf32> to vector<16x64xf32>
    %64 = arith.subf %54, %63 : vector<16x64xf32>
    %65 = arith.mulf %64, %64 : vector<16x64xf32>
    %cst_52 = arith.constant dense<0.000000e+00> : vector<16xf32>
    %66 = vector.multi_reduction <add>, %65, %cst_52 [1] : vector<16x64xf32> to vector<16xf32>
    %67 = vector.shape_cast %66 : vector<16xf32> to vector<16x1xf32>
    %cst_53 = arith.constant 6.400000e+01 : f32
    %68 = vector.broadcast %cst_53 : f32 to vector<16x1xf32>
    %69 = arith.divf %67, %68 : vector<16x1xf32>
    %70 = vector.broadcast %62 : vector<16x1xf32> to vector<16x64xf32>
    %71 = arith.subf %54, %70 : vector<16x64xf32>
    %cst_54 = arith.constant 9.99999974E-6 : f32
    %72 = vector.broadcast %cst_54 : f32 to vector<16x1xf32>
    %73 = arith.addf %69, %72 : vector<16x1xf32>
    %74 = math.rsqrt %73 : vector<16x1xf32>
    %75 = vector.broadcast %74 : vector<16x1xf32> to vector<16x64xf32>
    %76 = arith.mulf %71, %75 : vector<16x64xf32>
    %77 = vector.broadcast %56 : vector<1x64xf32> to vector<16x64xf32>
    %78 = arith.mulf %76, %77 : vector<16x64xf32>
    %79 = vector.broadcast %58 : vector<1x64xf32> to vector<16x64xf32>
    %80 = arith.addf %78, %79 : vector<16x64xf32>
    %81 = arith.truncf %80 : vector<16x64xf32> to vector<16x64xbf16>
    %c0_55 = arith.constant 0 : index
    %c0_56 = arith.constant 0 : index
    %c0_57 = arith.constant 0 : index
    %82 = vector.load %arg12[%c0_55, %c0_56, %c0_57] : memref<1x64x2048xbf16, #tpu.memory_space<vmem>>, vector<1x64x2048xbf16>
    %83 = vector.shape_cast %82 : vector<1x64x2048xbf16> to vector<64x2048xbf16>
    %cst_58 = arith.constant dense<0.000000e+00> : vector<16x2048xf32>
    %84 = tpu.matmul %81, %83, %cst_58 {dimension_numbers = #tpu.dot_dimension_numbers<[1], [0], [0], [1], [0, 0, 1, 1], [], []>} : vector<16x64xbf16>, vector<64x2048xbf16>, vector<16x2048xf32> -> vector<16x2048xf32>
    %c0_59 = arith.constant 0 : index
    %c0_60 = arith.constant 0 : index
    %c0_61 = arith.constant 0 : index
    %85 = vector.load %arg13[%c0_59, %c0_60, %c0_61] : memref<1x1x2048xf32, #tpu.memory_space<vmem>>, vector<1x1x2048xf32>
    %86 = vector.shape_cast %85 : vector<1x1x2048xf32> to vector<1x2048xf32>
    %87 = vector.broadcast %86 : vector<1x2048xf32> to vector<16x2048xf32>
    %88 = arith.addf %84, %87 : vector<16x2048xf32>
    %cst_62 = arith.constant 0.000000e+00 : f32
    %89 = vector.broadcast %cst_62 : f32 to vector<16x2048xf32>
    %90 = arith.maximumf %88, %89 : vector<16x2048xf32>
    %91 = arith.truncf %90 : vector<16x2048xf32> to vector<16x2048xbf16>
    %c0_63 = arith.constant 0 : index
    %c0_64 = arith.constant 0 : index
    %c0_65 = arith.constant 0 : index
    %92 = vector.load %arg14[%c0_63, %c0_64, %c0_65] : memref<1x2048x64xbf16, #tpu.memory_space<vmem>>, vector<1x2048x64xbf16>
    %93 = vector.shape_cast %92 : vector<1x2048x64xbf16> to vector<2048x64xbf16>
    %cst_66 = arith.constant dense<0.000000e+00> : vector<16x64xf32>
    %94 = tpu.matmul %91, %93, %cst_66 {dimension_numbers = #tpu.dot_dimension_numbers<[1], [0], [0], [1], [0, 0, 1, 1], [], []>} : vector<16x2048xbf16>, vector<2048x64xbf16>, vector<16x64xf32> -> vector<16x64xf32>
    %c0_67 = arith.constant 0 : index
    %c0_68 = arith.constant 0 : index
    %c0_69 = arith.constant 0 : index
    %95 = vector.load %arg15[%c0_67, %c0_68, %c0_69] : memref<1x1x64xf32, #tpu.memory_space<vmem>>, vector<1x1x64xf32>
    %96 = vector.shape_cast %95 : vector<1x1x64xf32> to vector<1x64xf32>
    %97 = vector.broadcast %96 : vector<1x64xf32> to vector<16x64xf32>
    %98 = arith.addf %94, %97 : vector<16x64xf32>
    %99 = arith.addf %80, %98 : vector<16x64xf32>
    %c0_70 = arith.constant 0 : index
    %c0_71 = arith.constant 0 : index
    %c0_72 = arith.constant 0 : index
    %100 = vector.load %arg18[%c0_70, %c0_71, %c0_72] : memref<1x1x64xf32, #tpu.memory_space<vmem>>, vector<1x1x64xf32>
    %101 = vector.shape_cast %100 : vector<1x1x64xf32> to vector<1x64xf32>
    %c0_73 = arith.constant 0 : index
    %c0_74 = arith.constant 0 : index
    %c0_75 = arith.constant 0 : index
    %102 = vector.load %arg19[%c0_73, %c0_74, %c0_75] : memref<1x1x64xf32, #tpu.memory_space<vmem>>, vector<1x1x64xf32>
    %103 = vector.shape_cast %102 : vector<1x1x64xf32> to vector<1x64xf32>
    %cst_76 = arith.constant dense<0.000000e+00> : vector<16xf32>
    %104 = vector.multi_reduction <add>, %99, %cst_76 [1] : vector<16x64xf32> to vector<16xf32>
    %105 = vector.shape_cast %104 : vector<16xf32> to vector<16x1xf32>
    %cst_77 = arith.constant 6.400000e+01 : f32
    %106 = vector.broadcast %cst_77 : f32 to vector<16x1xf32>
    %107 = arith.divf %105, %106 : vector<16x1xf32>
    %108 = vector.broadcast %107 : vector<16x1xf32> to vector<16x64xf32>
    %109 = arith.subf %99, %108 : vector<16x64xf32>
    %110 = arith.mulf %109, %109 : vector<16x64xf32>
    %cst_78 = arith.constant dense<0.000000e+00> : vector<16xf32>
    %111 = vector.multi_reduction <add>, %110, %cst_78 [1] : vector<16x64xf32> to vector<16xf32>
    %112 = vector.shape_cast %111 : vector<16xf32> to vector<16x1xf32>
    %cst_79 = arith.constant 6.400000e+01 : f32
    %113 = vector.broadcast %cst_79 : f32 to vector<16x1xf32>
    %114 = arith.divf %112, %113 : vector<16x1xf32>
    %115 = vector.broadcast %107 : vector<16x1xf32> to vector<16x64xf32>
    %116 = arith.subf %99, %115 : vector<16x64xf32>
    %cst_80 = arith.constant 9.99999974E-6 : f32
    %117 = vector.broadcast %cst_80 : f32 to vector<16x1xf32>
    %118 = arith.addf %114, %117 : vector<16x1xf32>
    %119 = math.rsqrt %118 : vector<16x1xf32>
    %120 = vector.broadcast %119 : vector<16x1xf32> to vector<16x64xf32>
    %121 = arith.mulf %116, %120 : vector<16x64xf32>
    %122 = vector.broadcast %101 : vector<1x64xf32> to vector<16x64xf32>
    %123 = arith.mulf %121, %122 : vector<16x64xf32>
    %124 = vector.broadcast %103 : vector<1x64xf32> to vector<16x64xf32>
    %125 = arith.addf %123, %124 : vector<16x64xf32>
    %c0_81 = arith.constant 0 : index
    %c0_82 = arith.constant 0 : index
    %126 = vector.load %arg28[%c0_81, %c0_82] : memref<16x64xf32, #tpu.memory_space<vmem>>, vector<16x64xf32>
    tpu.vector_store %arg28[%c0_81, %c0_82], %125 {strides = array<i32>} : memref<16x64xf32, #tpu.memory_space<vmem>>, vector<16x64xf32>,
    %c3_i32 = arith.constant 3 : i32
    %127 = arith.cmpi eq, %arg0, %c3_i32 : i32
    %128 = arith.extui %127 : i1 to i32
    %c0_i32_83 = arith.constant 0 : i32
    %129 = arith.cmpi ne, %128, %c0_i32_83 : i32
    scf.if %129 {
      %c0_84 = arith.constant 0 : index
      %c0_85 = arith.constant 0 : index
      %130 = vector.load %arg26[%c0_84, %c0_85] : memref<2x16xf32, #tpu.memory_space<vmem>>, vector<2x16xf32>
      %cst_86 = arith.constant dense<0.000000e+00> : vector<2x64xf32>
      %131 = tpu.matmul %130, %125, %cst_86 {dimension_numbers = #tpu.dot_dimension_numbers<[1], [0], [0], [1], [0, 0, 1, 1], [], []>} : vector<2x16xf32>, vector<16x64xf32>, vector<2x64xf32> -> vector<2x64xf32>
      %c0_87 = arith.constant 0 : index
      %c0_88 = arith.constant 0 : index
      %132 = vector.load %arg20[%c0_87, %c0_88] : memref<64x6xf32, #tpu.memory_space<vmem>>, vector<64x6xf32>
      %cst_89 = arith.constant dense<0.000000e+00> : vector<2x6xf32>
      %133 = tpu.matmul %131, %132, %cst_89 {dimension_numbers = #tpu.dot_dimension_numbers<[1], [0], [0], [1], [0, 0, 1, 1], [], []>} : vector<2x64xf32>, vector<64x6xf32>, vector<2x6xf32> -> vector<2x6xf32>
      %c0_90 = arith.constant 0 : index
      %c0_91 = arith.constant 0 : index
      %134 = vector.load %arg21[%c0_90, %c0_91] : memref<1x6xf32, #tpu.memory_space<vmem>>, vector<1x6xf32>
      %135 = vector.broadcast %134 : vector<1x6xf32> to vector<2x6xf32>
      %136 = arith.addf %133, %135 : vector<2x6xf32>
      %c0_92 = arith.constant 0 : index
      %c0_93 = arith.constant 0 : index
      %137 = vector.load %arg27[%c0_92, %c0_93] : memref<2x6xf32, #tpu.memory_space<vmem>>, vector<2x6xf32>
      tpu.vector_store %arg27[%c0_92, %c0_93], %136 {strides = array<i32>} : memref<2x6xf32, #tpu.memory_space<vmem>>, vector<2x6xf32>,
    } else {
    }
    return
  }
  func.func @transform_0(%arg0: i32) -> (i32, i32) {
    %c0_i32 = arith.constant 0 : i32
    %c0_i32_0 = arith.constant 0 : i32
    %c0_i32_1 = arith.constant 0 : i32
    return %c0_i32, %c0_i32_0 : i32, i32
  }
  func.func @transform_1(%arg0: i32) -> (i32, i32) {
    %c0_i32 = arith.constant 0 : i32
    %c0_i32_0 = arith.constant 0 : i32
    %c0_i32_1 = arith.constant 0 : i32
    return %c0_i32, %c0_i32_0 : i32, i32
  }
  func.func @transform_2(%arg0: i32) -> (i32, i32) {
    %c0_i32 = arith.constant 0 : i32
    %c0_i32_0 = arith.constant 0 : i32
    %c0_i32_1 = arith.constant 0 : i32
    return %c0_i32, %c0_i32_0 : i32, i32
  }
  func.func @transform_3(%arg0: i32) -> (i32, i32, i32) {
    %c0_i32 = arith.constant 0 : i32
    %c0_i32_0 = arith.constant 0 : i32
    %c0_i32_1 = arith.constant 0 : i32
    return %arg0, %c0_i32, %c0_i32_0 : i32, i32, i32
  }
  func.func @transform_4(%arg0: i32) -> (i32, i32, i32) {
    %c0_i32 = arith.constant 0 : i32
    %c0_i32_0 = arith.constant 0 : i32
    %c0_i32_1 = arith.constant 0 : i32
    return %arg0, %c0_i32, %c0_i32_0 : i32, i32, i32
  }
  func.func @transform_5(%arg0: i32) -> (i32, i32, i32) {
    %c0_i32 = arith.constant 0 : i32
    %c0_i32_0 = arith.constant 0 : i32
    %c0_i32_1 = arith.constant 0 : i32
    return %arg0, %c0_i32, %c0_i32_0 : i32, i32, i32
  }
  func.func @transform_6(%arg0: i32) -> (i32, i32, i32) {
    %c0_i32 = arith.constant 0 : i32
    %c0_i32_0 = arith.constant 0 : i32
    %c0_i32_1 = arith.constant 0 : i32
    return %arg0, %c0_i32, %c0_i32_0 : i32, i32, i32
  }
  func.func @transform_7(%arg0: i32) -> (i32, i32, i32) {
    %c0_i32 = arith.constant 0 : i32
    %c0_i32_0 = arith.constant 0 : i32
    %c0_i32_1 = arith.constant 0 : i32
    return %arg0, %c0_i32, %c0_i32_0 : i32, i32, i32
  }
  func.func @transform_8(%arg0: i32) -> (i32, i32, i32) {
    %c0_i32 = arith.constant 0 : i32
    %c0_i32_0 = arith.constant 0 : i32
    %c0_i32_1 = arith.constant 0 : i32
    return %arg0, %c0_i32, %c0_i32_0 : i32, i32, i32
  }
  func.func @transform_9(%arg0: i32) -> (i32, i32, i32) {
    %c0_i32 = arith.constant 0 : i32
    %c0_i32_0 = arith.constant 0 : i32
    %c0_i32_1 = arith.constant 0 : i32
    return %arg0, %c0_i32, %c0_i32_0 : i32, i32, i32
  }
  func.func @transform_10(%arg0: i32) -> (i32, i32, i32) {
    %c0_i32 = arith.constant 0 : i32
    %c0_i32_0 = arith.constant 0 : i32
    %c0_i32_1 = arith.constant 0 : i32
    return %arg0, %c0_i32, %c0_i32_0 : i32, i32, i32
  }
  func.func @transform_11(%arg0: i32) -> (i32, i32, i32) {
    %c0_i32 = arith.constant 0 : i32
    %c0_i32_0 = arith.constant 0 : i32
    %c0_i32_1 = arith.constant 0 : i32
    return %arg0, %c0_i32, %c0_i32_0 : i32, i32, i32
  }
  func.func @transform_12(%arg0: i32) -> (i32, i32, i32) {
    %c0_i32 = arith.constant 0 : i32
    %c0_i32_0 = arith.constant 0 : i32
    %c0_i32_1 = arith.constant 0 : i32
    return %arg0, %c0_i32, %c0_i32_0 : i32, i32, i32
  }
  func.func @transform_13(%arg0: i32) -> (i32, i32, i32) {
    %c0_i32 = arith.constant 0 : i32
    %c0_i32_0 = arith.constant 0 : i32
    %c0_i32_1 = arith.constant 0 : i32
    return %arg0, %c0_i32, %c0_i32_0 : i32, i32, i32
  }
  func.func @transform_14(%arg0: i32) -> (i32, i32, i32) {
    %c0_i32 = arith.constant 0 : i32
    %c0_i32_0 = arith.constant 0 : i32
    %c0_i32_1 = arith.constant 0 : i32
    return %arg0, %c0_i32, %c0_i32_0 : i32, i32, i32
  }
  func.func @transform_15(%arg0: i32) -> (i32, i32, i32) {
    %c0_i32 = arith.constant 0 : i32
    %c0_i32_0 = arith.constant 0 : i32
    %c0_i32_1 = arith.constant 0 : i32
    return %arg0, %c0_i32, %c0_i32_0 : i32, i32, i32
  }
  func.func @transform_16(%arg0: i32) -> (i32, i32, i32) {
    %c0_i32 = arith.constant 0 : i32
    %c0_i32_0 = arith.constant 0 : i32
    %c0_i32_1 = arith.constant 0 : i32
    return %arg0, %c0_i32, %c0_i32_0 : i32, i32, i32
  }
  func.func @transform_17(%arg0: i32) -> (i32, i32, i32) {
    %c0_i32 = arith.constant 0 : i32
    %c0_i32_0 = arith.constant 0 : i32
    %c0_i32_1 = arith.constant 0 : i32
    return %arg0, %c0_i32, %c0_i32_0 : i32, i32, i32
  }
  func.func @transform_18(%arg0: i32) -> (i32, i32, i32) {
    %c0_i32 = arith.constant 0 : i32
    %c0_i32_0 = arith.constant 0 : i32
    %c0_i32_1 = arith.constant 0 : i32
    return %arg0, %c0_i32, %c0_i32_0 : i32, i32, i32
  }
  func.func @transform_19(%arg0: i32) -> (i32, i32) {
    %c0_i32 = arith.constant 0 : i32
    %c0_i32_0 = arith.constant 0 : i32
    %c0_i32_1 = arith.constant 0 : i32
    return %c0_i32, %c0_i32_0 : i32, i32
  }
  func.func @transform_20(%arg0: i32) -> (i32, i32) {
    %c0_i32 = arith.constant 0 : i32
    %c0_i32_0 = arith.constant 0 : i32
    %c0_i32_1 = arith.constant 0 : i32
    return %c0_i32, %c0_i32_0 : i32, i32
  }
  func.func @transform_21(%arg0: i32) -> (i32, i32) {
    %c0_i32 = arith.constant 0 : i32
    %c0_i32_0 = arith.constant 0 : i32
    %c0_i32_1 = arith.constant 0 : i32
    return %c0_i32, %c0_i32_0 : i32, i32
  }
  func.func @transform_22(%arg0: i32) -> (i32, i32) {
    %c0_i32 = arith.constant 0 : i32
    %c0_i32_0 = arith.constant 0 : i32
    %c0_i32_1 = arith.constant 0 : i32
    return %c0_i32, %c0_i32_0 : i32, i32
  }
  func.func @transform_23(%arg0: i32) -> (i32, i32) {
    %c0_i32 = arith.constant 0 : i32
    %c0_i32_0 = arith.constant 0 : i32
    %c0_i32_1 = arith.constant 0 : i32
    return %c0_i32, %c0_i32_0 : i32, i32
  }
  func.func @transform_24(%arg0: i32) -> (i32, i32) {
    %c0_i32 = arith.constant 0 : i32
    %c0_i32_0 = arith.constant 0 : i32
    %c0_i32_1 = arith.constant 0 : i32
    return %c0_i32, %c0_i32_0 : i32, i32
  }
  func.func @transform_25(%arg0: i32) -> (i32, i32) {
    %c0_i32 = arith.constant 0 : i32
    %c0_i32_0 = arith.constant 0 : i32
    %c0_i32_1 = arith.constant 0 : i32
    return %c0_i32, %c0_i32_0 : i32, i32
  }
  func.func @transform_26(%arg0: i32) -> (i32, i32) {
    %c0_i32 = arith.constant 0 : i32
    %c0_i32_0 = arith.constant 0 : i32
    %c0_i32_1 = arith.constant 0 : i32
    return %c0_i32, %c0_i32_0 : i32, i32
  }
}

</mosaic_0001>

<bundles_post_ra>
// kernel: tpu_custom_call.1
= control target key start
LH: loop header
LB: loop body
LE: loop exit
PB: predicated region body
PF: predicated region fallthrough
CT: control target
= control target key end

     0   :  { %s6282_s0 = inlined_call_operand.vmem [shape: f32[16,8], index: 0, kind: input, shape index: {}]   ;;  %s6283_s1 = inlined_call_operand.vmem [shape: f32[8,64], index: 1, kind: input, shape index: {}]   ;;  %s6284_s2 = inlined_call_operand.vmem [shape: f32[1,64], index: 2, kind: input, shape index: {}]   ;;  %s6285_s3 = inlined_call_operand.vmem [shape: f32[4,64,64], index: 3, kind: input, shape index: {}]   ;;  %s6286_s4 = inlined_call_operand.vmem [shape: f32[4,64,64], index: 4, kind: input, shape index: {}]   ;;  %s6287_s5 = inlined_call_operand.vmem [shape: f32[4,64,64], index: 5, kind: input, shape index: {}]   ;;  %s6288_s6 = inlined_call_operand.vmem [shape: f32[4,1,64], index: 6, kind: input, shape index: {}]   ;;  %s6289_s7 = inlined_call_operand.vmem [shape: f32[4,1,64], index: 7, kind: input, shape index: {}]   ;;  %s6290_s8 = inlined_call_operand.vmem [shape: f32[4,1,64], index: 8, kind: input, shape index: {}]   ;;  %s6291_s9 = inlined_call_operand.vmem [shape: f32[4,64,64], index: 9, kind: input, shape index: {}]   ;;  %s6292_s10 = inlined_call_operand.vmem [shape: f32[4,1,64], index: 10, kind: input, shape index: {}]   ;;  %s6293_s11 = inlined_call_operand.vmem [shape: bf16[4,64,2048], index: 11, kind: input, shape index: {}]   ;;  %s6294_s12 = inlined_call_operand.vmem [shape: f32[4,1,2048], index: 12, kind: input, shape index: {}]   ;;  %s6295_s13 = inlined_call_operand.vmem [shape: bf16[4,2048,64], index: 13, kind: input, shape index: {}]   ;;  %s6296_s14 = inlined_call_operand.vmem [shape: f32[4,1,64], index: 14, kind: input, shape index: {}]   ;;  %s6297_s15 = inlined_call_operand.vmem [shape: f32[4,1,64], index: 15, kind: input, shape index: {}]   ;;  %s6298_s16 = inlined_call_operand.vmem [shape: f32[4,1,64], index: 16, kind: input, shape index: {}]   ;;  %s6299_s17 = inlined_call_operand.vmem [shape: f32[4,1,64], index: 17, kind: input, shape index: {}]   ;;  %s6300_s18 = inlined_call_operand.vmem [shape: f32[4,1,64], index: 18, kind: input, shape index: {}]   ;;  %s6301_s19 = inlined_call_operand.vmem [shape: f32[64,6], index: 19, kind: input, shape index: {}]   ;;  %s6302_s20 = inlined_call_operand.vmem [shape: f32[1,6], index: 20, kind: input, shape index: {}]   ;;  %s6303_s21 = inlined_call_operand.vmem [shape: f32[80,16], index: 21, kind: input, shape index: {}]   ;;  %s6304_s22 = inlined_call_operand.vmem [shape: f32[16,80], index: 22, kind: input, shape index: {}]   ;;  %s6305_s23 = inlined_call_operand.vmem [shape: f32[80,64], index: 23, kind: input, shape index: {}]   ;;  %s6306_s24 = inlined_call_operand.vmem [shape: f32[80,16], index: 24, kind: input, shape index: {}]   ;;  %s6307_s25 = inlined_call_operand.vmem [shape: f32[2,16], index: 25, kind: input, shape index: {}]   ;;  %s6308_s26 = inlined_call_operand.hbm [shape: f32[2,6], index: 26, kind: output, shape index: {}]  }
   0x1   :  { %6319 = sst [smem:[#allocation10_spill]] %s6282_s0 }
   0x2   :  { %6320 = sst [smem:[#allocation11_spill]] %s6283_s1 }
   0x3   :  { %6321 = sst [smem:[#allocation12_spill]] %s6284_s2 }
   0x4   :  { %6322 = sst [smem:[#allocation13_spill]] %s6285_s3 }
   0x5   :  { %6323 = sst [smem:[#allocation14_spill]] %s6286_s4 }
   0x6   :  { %6324 = sst [smem:[#allocation15_spill]] %s6287_s5 }
   0x7   :  { %6325 = sst [smem:[#allocation16_spill]] %s6288_s6 }
   0x8   :  { %6326 = sst [smem:[#allocation17_spill]] %s6289_s7 }
   0x9   :  { %6327 = sst [smem:[#allocation18_spill]] %s6290_s8 }
   0xa   :  { %6328 = sst [smem:[#allocation19_spill]] %s6291_s9 }
   0xb   :  { %6329 = sst [smem:[#allocation20_spill]] %s6292_s10 }
   0xc   :  { %6330 = sst [smem:[#allocation21_spill]] %s6301_s19 }
   0xd   :  { %6331 = sst [smem:[#allocation22_spill]] %s6302_s20 }
   0xe   :  { %6332 = sst [smem:[#allocation23_spill]] %s6303_s21 }
   0xf   :  { %6333 = sst [smem:[#allocation24_spill]] %s6304_s22 }
  0x10   :  { %6334 = sst [smem:[#allocation25_spill]] %s6305_s23 }
  0x11   :  { %6335 = sst [smem:[#allocation26_spill]] %s6306_s24 }
  0x12   :  { %6336 = sst [smem:[#allocation27_spill]] %s6307_s25 }
  0x13   :  { %6337 = sst [smem:[#allocation28_spill]] %s6308_s26 }
  0x14   :  { %31 = vsyncpa [#allocation4], 0  ;;  %s5428_s27 = smov 0  }
  0x15 LB: > { %6338 = sst [smem:[#allocation6_spill]] %s5289_s27  ;;  %s5434_s3 = sadd.s32 4294967295, %s5289_s27   ;;  %s5289_s27 = sphi %s5428_s27, %s37_s27  }
  0x16   : > { %p4125_p0 = scmp.ge.s32.totalorder %s5289_s27, 1  ;;  %p839_p1 = scmp.lt.s32.totalorder %s5289_s27, 5 }
  0x18   : > { %p840_p2 = pnand %p4125_p0, %p839_p1 }
  0x1a   : > { %843 = sbr.rel (%p840_p2) target bundleno = 2636 (0xa4c), region = 124 }
  0x1f   : > { %p960_p3 = scmp.lt.s32.totalorder %s5434_s3, 3  ;;  %s6340_s2 = sld [smem:[#allocation13_spill]] }
  0x20   : > { %s6342_s1 = sld [smem:[#allocation14_spill]]  ;;  %p4139_p4 = scmp.ne.s32.totalorder %s5434_s3, 0 }
  0x21   : > { %s5440_s7 = scalar_select %p960_p3, %s5434_s3, 3 }
  0x22   : > { %s6344_s19 = sld [smem:[#allocation15_spill]] }
  0x23   : > { %s4975_s28 = sshll.u32 %s5440_s7, 6  ;;  %s6346_s29 = sld [smem:[#allocation17_spill]] }
  0x24   : > { %s6348_s10 = sld [smem:[#allocation19_spill]]  ;;  %s4979_s26 = sshll.u32 %s5440_s7, 9 }
  0x25   : > { %s5450_s5 = scalar_lea.vmem %s6340_s2, %s4975_s28  ;;  %s4136_s8 = sshll.u32 %s5440_s7, 4 }
  0x26   : > { %6341 = sst [smem:[#allocation7_spill]] %s5450_s5  ;;  %s5455_s27 = scalar_lea.vmem %s6342_s1, %s4975_s28 }
  0x27   : > { %6343 = sst [smem:[#allocation8_spill]] %s5455_s27  ;;  %s5483_s5 = scalar_lea.vmem %s6293_s11, %s4979_s26 }
  0x28   : > { %s5460_s25 = scalar_lea.vmem %s6344_s19, %s4975_s28  ;;  %s5489_s9 = scalar_lea.vmem %s6294_s12, %s4136_s8 }
  0x29   : > { %6345 = sst [smem:[#allocation9_spill]] %s5460_s25  ;;  %s980_s0 = scalar_lea.vmem %s6346_s29, %s5440_s7 }
  0x2a   : > { %s5473_s6 = scalar_lea.vmem %s6348_s10, %s4975_s28  ;;  %s4980_s30 = sshll.u32 %s5440_s7, 10 }
  0x2b   : > { %s5495_s28 = scalar_lea.vmem %s6295_s13, %s4980_s30  ;;  %s1011_s1 = scalar_lea.vmem %s6297_s15, %s5440_s7 }
  0x2c   : > { %s1014_s4 = scalar_lea.vmem %s6298_s16, %s5440_s7  ;;  %s1017_s20 = scalar_lea.vmem %s6299_s17, %s5440_s7 }
  0x2d   : > { %s1020_s30 = scalar_lea.vmem %s6300_s18, %s5440_s7  ;;  %1025 = sbr.rel (%p4139_p4) target bundleno = 184 (0xb8), region = 128 }
  0x2e   : > { %s6350_s27 = sld [smem:[#allocation11_spill]] (!%p4139_p4) }
  0x2f   : > { %s6351_s2 = sld [smem:[#allocation10_spill]] (!%p4139_p4) }
  0x30   : > { %s6352_s29 = sld [smem:[#allocation12_spill]] (!%p4139_p4) }
  0x32   : > { %vm1033_vm0 = vcmask 64512   ;;  %vm1063_vm1 = vcmask 523264  }
  0x34   : > { %v1028_v0 = vld [vmem:[%s6350_s27] sm:$0xff] }
  0x35   : > { %v1026_v1 = vld [vmem:[%s6351_s2] sm:$0xff]  ;;  %v1027_v2 = vld [vmem:[%s6351_s2 + $0x8] sm:$0xff]  ;;  %1055 = vmatpush.msra.mxu0 %v1028_v0  ;;  %5173 = vmatpush.msra.mxu1 %v1028_v0 }
  0x36   : > { %4140 = vmatmul.msk.f32.vlgmr.msra.gmra.mxu0 %vm1033_vm0, %v1026_v1  ;;  %4141 = vmatmul.msk.f32.vlgmr.msra.gmra.mxu1 %vm1033_vm0, %v1027_v2  ;;  %v5190_v3 = vld [vmem:[%s6352_s29] ss:$0 sm:$0xff] }
  0xb3   : > { %v1057_v4 = vpop.f32.mrf.mxu0  ;;  %v1060_v5 = vpop.f32.mrf.mxu1 }
  0xb4   : > { %v1058_v6 = vadd.f32 %v5190_v3, %v1057_v4  ;;  %v1061_v7 = vadd.f32 %v5190_v3, %v1060_v5 }
  0xb6   : > { %1064 = vst.msk [vmem:[#allocation2] sm:$0xff] %vm1063_vm1, %v1058_v6 }
  0xb7   : > { %1065 = vst.msk [vmem:[#allocation2 + $0x8] sm:$0xff] %vm1063_vm1, %v1061_v7 }
  0xb8 PF: > { %s6353_s23 = sld [smem:[#allocation7_spill]]  ;;  %vm1080_vm2 = vcmask 523264   ;;  %vm1202_vm3 = vcmask 130048   ;;  %v5192_v39 = vld [vmem:[%s980_s0] ss:$0 sm:$0xff]  ;;  %p4968_p5 = scmp.ne.s32.totalorder %s5434_s3, 3 }
  0xb9   : > { %s6354_s24 = sld [smem:[#allocation8_spill]] }
  0xba   : > { %s6355_s10 = sld [smem:[#allocation16_spill]] }
  0xbb   : > { %s6357_s22 = sld [smem:[#allocation23_spill]] }
  0xbc   : > { %s6361_s27 = sld [smem:[#allocation9_spill]] }
  0xbd   : > { %v5544_v22 = vld [vmem:[#allocation2] sm:$0xff]  ;;  %s6364_s29 = sld [smem:[#allocation24_spill]] }
  0xbe   : > { %v1075_v8 = vld [vmem:[%s6353_s23 + $0x38] sm:$0xff]  ;;  %v1074_v9 = vld [vmem:[%s6353_s23 + $0x30] sm:$0xff]  ;;  %v1073_v10 = vld [vmem:[%s6353_s23 + $0x28] sm:$0xff] }
  0xbf   : > { %1095 = vmatpush.msra.mxu0 %v1075_v8  ;;  %v1117_v11 = vld [vmem:[%s6354_s24 + $0x38] sm:$0xff]  ;;  %v1116_v12 = vld [vmem:[%s6354_s24 + $0x30] sm:$0xff]  ;;  %v1072_v13 = vld [vmem:[%s6353_s23 + $0x20] sm:$0xff] }
  0xc0   : > { %1130 = vmatpush.msra.mxu1 %v1117_v11  ;;  %v1071_v14 = vld [vmem:[%s6353_s23 + $0x18] sm:$0xff]  ;;  %v1115_v15 = vld [vmem:[%s6354_s24 + $0x28] sm:$0xff]  ;;  %v1070_v16 = vld [vmem:[%s6353_s23 + $0x10] sm:$0xff]  ;;  %s6356_s25 = scalar_lea.vmem %s6355_s10, %s5440_s7 }
  0xc1   : > { %1096 = vmatpush.msra.mxu0 %v1074_v9  ;;  %v1114_v17 = vld [vmem:[%s6354_s24 + $0x20] sm:$0xff]  ;;  %v1113_v18 = vld [vmem:[%s6354_s24 + $0x18] sm:$0xff]  ;;  %v1069_v19 = vld [vmem:[%s6353_s23 + $0x8] sm:$0xff] }
  0xc2   : > { %1131 = vmatpush.msra.mxu1 %v1116_v12  ;;  %v1112_v20 = vld [vmem:[%s6354_s24 + $0x10] sm:$0xff]  ;;  %v1068_v21 = vld [vmem:[%s6353_s23] sm:$0xff]  ;;  %v1111_v23 = vld [vmem:[%s6354_s24 + $0x8] sm:$0xff]  ;;  %s6359_s23 = sld [smem:[#allocation25_spill]] }
  0xc3   : > { %1097 = vmatpush.msra.mxu0 %v1073_v10  ;;  %v1110_v24 = vld [vmem:[%s6354_s24] sm:$0xff]  ;;  %v5552_v25 = vld [vmem:[#allocation2 + $0x8] sm:$0xff]  ;;  %v1183_v34 = vld [vmem:[%s6357_s22 + $0x8] sm:$0xff]  ;;  %s6360_s24 = sld [smem:[#allocation26_spill]] }
  0xc4   : > { %1132 = vmatpush.msra.mxu1 %v1115_v15  ;;  %v5191_v27 = vld [vmem:[%s6356_s25] ss:$0 sm:$0xff]  ;;  %v1184_v35 = vld [vmem:[%s6357_s22 + $0x10] sm:$0xff]  ;;  %v1185_v36 = vld [vmem:[%s6357_s22 + $0x18] sm:$0xff]  ;;  %s6362_s25 = sld [smem:[#allocation18_spill]] }
  0xc5   : > { %1098 = vmatpush.msra.mxu0 %v1072_v13  ;;  %v1182_v33 = vld [vmem:[%s6357_s22] sm:$0xff]  ;;  %v1187_v43 = vld [vmem:[%s6357_s22 + $0x28] sm:$0xff]  ;;  %v1188_v44 = vld [vmem:[%s6357_s22 + $0x30] sm:$0xff] }
  0xc6   : > { %1133 = vmatpush.msra.mxu1 %v1114_v17  ;;  %v1186_v38 = vld [vmem:[%s6357_s22 + $0x20] sm:$0xff]  ;;  %v1189_v45 = vld [vmem:[%s6357_s22 + $0x38] sm:$0xff]  ;;  %v1191_v47 = vld [vmem:[%s6357_s22 + $0x48] sm:$0xff] }
  0xc7   : > { %1099 = vmatpush.msra.mxu0 %v1071_v14  ;;  %v1190_v46 = vld [vmem:[%s6357_s22 + $0x40] sm:$0xff] }
  0xc8   : > { %1134 = vmatpush.msra.mxu1 %v1113_v18  ;;  %v5613_v48 = vld [vmem:[%s6359_s23] sm:$0xff]  ;;  %v5620_v51 = vld [vmem:[%s6359_s23 + $0x8] sm:$0xff]  ;;  %v5627_v54 = vld [vmem:[%s6359_s23 + $0x10] sm:$0xff] }
  0xc9   : > { %1100 = vmatpush.msra.mxu0 %v1070_v16  ;;  %v5634_v57 = vld [vmem:[%s6359_s23 + $0x18] sm:$0xff]  ;;  %v5641_v60 = vld [vmem:[%s6359_s23 + $0x20] sm:$0xff]  ;;  %v5648_v63 = vld [vmem:[%s6359_s23 + $0x28] sm:$0xff] }
  0xca   : > { %1135 = vmatpush.msra.mxu1 %v1112_v20  ;;  %v5655_v2 = vld [vmem:[%s6359_s23 + $0x30] sm:$0xff]  ;;  %v5662_v5 = vld [vmem:[%s6359_s23 + $0x38] sm:$0xff]  ;;  %v5669_v8 = vld [vmem:[%s6359_s23 + $0x40] sm:$0xff]  ;;  %s6363_s26 = scalar_lea.vmem %s6362_s25, %s5440_s7  ;;  %s6365_s25 = sld [smem:[#allocation20_spill]] }
  0xcb   : > { %1101 = vmatpush.msra.mxu0 %v1069_v19  ;;  %v5676_v11 = vld [vmem:[%s6359_s23 + $0x48] sm:$0xff]  ;;  %v1290_v14 = vld [vmem:[%s6360_s24] sm:$0xff] }
  0xcc   : > { %1136 = vmatpush.msra.mxu1 %v1111_v23  ;;  %v1291_v18 = vld [vmem:[%s6360_s24 + $0x8] sm:$0xff]  ;;  %v1292_v23 = vld [vmem:[%s6360_s24 + $0x10] sm:$0xff] }
  0xcd   : > { %1102 = vmatpush.msra.mxu0 %v1068_v21 }
  0xce   : > { %4142 = vmatmul.msk.f32.vlgmr.msra.gmra.mxu0 %vm1080_vm2, %v5544_v22  ;;  %1137 = vmatpush.msra.mxu1 %v1110_v24 }
  0xcf   : > { %4144 = vmatmul.msk.f32.vlgmr.msra.gmra.mxu1 %vm1080_vm2, %v5544_v22 }
  0xd6   : > { %4143 = vmatmul.msk.f32.gmra.mxu0 %vm1080_vm2, %v5552_v25 }
  0xd7   : > { %4145 = vmatmul.msk.f32.gmra.mxu1 %vm1080_vm2, %v5552_v25 }
 0x14b   : > { %v1104_v26 = vpop.f32.mrf.mxu0 }
 0x14c   : > { %v1105_v29 = vadd.f32 %v5191_v27, %v1104_v26  ;;  %v1139_v37 = vpop.f32.mrf.mxu1 }
 0x14d   : > { %v1140_v42 = vadd.f32 %v5192_v39, %v1139_v37  ;;  %v1149_v37 = vld [vmem:[%s6361_s27 + $0x20] sm:$0xff] }
 0x14e   : > { %v1180_v32 = vmul.f32 0.35355338, %v1105_v29 }
 0x153   : > { %v1107_v28 = vpop.f32.mrf.mxu0 }
 0x154   : > { %v1108_v30 = vadd.f32 %v5191_v27, %v1107_v28  ;;  %v1142_v40 = vpop.f32.mrf.mxu1  ;;  %v1293_v28 = vld [vmem:[%s6360_s24 + $0x18] sm:$0xff] }
 0x155   : > { %v1143_v41 = vadd.f32 %v5192_v39, %v1142_v40  ;;  %v1148_v39 = vld [vmem:[%s6361_s27 + $0x18] sm:$0xff] }
 0x156   : > { %v1181_v31 = vmul.f32 0.35355338, %v1108_v30 }
 0x157   : > { %4158 = vmatpush.xpose.msk.msrb.mxu0 %vm1080_vm2, %v1143_v41  ;;  %v1147_v41 = vld [vmem:[%s6361_s27 + $0x10] sm:$0xff] }
 0x158   : > { %1247 = vmatpush.msra.mxu3 %v1181_v31 }
 0x15a   : > { %1248 = vmatpush.msra.mxu3 %v1180_v32  ;;  %v1152_v32 = vld [vmem:[%s6361_s27 + $0x38] sm:$0xff] }
 0x15b   : > { %4148 = vmatmul.msk.f32.vlgmr.msra.gmra.mxu3 %vm1202_vm3, %v1182_v33  ;;  %4159 = vmatpush.xpose.msk.msrb.mxu0 %vm1080_vm2, %v1140_v42  ;;  %v1151_v33 = vld [vmem:[%s6361_s27 + $0x30] sm:$0xff]  ;;  %v1295_v42 = vld [vmem:[%s6360_s24 + $0x28] sm:$0xff] }
 0x15c   : > { %1165 = vmatpush.msra.mxu2 %v1152_v32 }
 0x15e   : > { %1166 = vmatpush.msra.mxu2 %v1151_v33 }
 0x163   : > { %4149 = vmatmul.msk.f32.gmra.mxu3 %vm1202_vm3, %v1183_v34  ;;  %v1294_v34 = vld [vmem:[%s6360_s24 + $0x20] sm:$0xff] }
 0x16b   : > { %4150 = vmatmul.msk.f32.gmra.mxu3 %vm1202_vm3, %v1184_v35  ;;  %v1150_v35 = vld [vmem:[%s6361_s27 + $0x28] sm:$0xff] }
 0x16c   : > { %1167 = vmatpush.msra.mxu2 %v1150_v35 }
 0x16e   : > { %1168 = vmatpush.msra.mxu2 %v1149_v37 }
 0x170   : > { %1169 = vmatpush.msra.mxu2 %v1148_v39 }
 0x172   : > { %1170 = vmatpush.msra.mxu2 %v1147_v41 }
 0x173   : > { %4151 = vmatmul.msk.f32.gmra.mxu3 %vm1202_vm3, %v1185_v36 }
 0x17b   : > { %4152 = vmatmul.msk.f32.gmra.mxu3 %vm1202_vm3, %v1186_v38 }
 0x183   : > { %4153 = vmatmul.msk.f32.gmra.mxu3 %vm1202_vm3, %v1187_v43  ;;  %v1146_v43 = vld [vmem:[%s6361_s27 + $0x8] sm:$0xff] }
 0x184   : > { %1171 = vmatpush.msra.mxu2 %v1146_v43 }
 0x18b   : > { %4154 = vmatmul.msk.f32.gmra.mxu3 %vm1202_vm3, %v1188_v44 }
 0x193   : > { %4155 = vmatmul.msk.f32.gmra.mxu3 %vm1202_vm3, %v1189_v45 }
 0x19b   : > { %4156 = vmatmul.msk.f32.gmra.mxu3 %vm1202_vm3, %v1190_v46 }
 0x1a3   : > { %4157 = vmatmul.msk.f32.gmra.mxu3 %vm1202_vm3, %v1191_v47  ;;  %v1296_v47 = vld [vmem:[%s6360_s24 + $0x30] sm:$0xff] }
 0x1de   : > { %v1250_v49 = vpop.f32.mrf.mxu3 }
 0x1df   : > { %v1280_v50 = vmul.f32 %v1250_v49, %v5613_v48 }
 0x1e1   : > { %4160 = vmatmul.msk.f32.vlgmr.msrb.gmra.mxu0 %vm1080_vm2, %v1280_v50 }
 0x1e6   : > { %v1253_v52 = vpop.f32.mrf.mxu3 }
 0x1e7   : > { %v1281_v53 = vmul.f32 %v1253_v52, %v5620_v51 }
 0x1e9   : > { %4161 = vmatmul.msk.f32.gmra.mxu0 %vm1080_vm2, %v1281_v53  ;;  %v1297_v53 = vld [vmem:[%s6360_s24 + $0x38] sm:$0xff] }
 0x1ee   : > { %v1256_v55 = vpop.f32.mrf.mxu3 }
 0x1ef   : > { %v1282_v56 = vmul.f32 %v1256_v55, %v5627_v54 }
 0x1f1   : > { %4162 = vmatmul.msk.f32.gmra.mxu0 %vm1080_vm2, %v1282_v56 }
 0x1f6   : > { %v1259_v58 = vpop.f32.mrf.mxu3 }
 0x1f7   : > { %v1283_v59 = vmul.f32 %v1259_v58, %v5634_v57 }
 0x1f9   : > { %4163 = vmatmul.msk.f32.gmra.mxu0 %vm1080_vm2, %v1283_v59  ;;  %v1145_v59 = vld [vmem:[%s6361_s27] sm:$0xff] }
 0x1fa   : > { %1172 = vmatpush.msra.mxu2 %v1145_v59 }
 0x1fb   : > { %4146 = vmatmul.msk.f32.vlgmr.msra.gmra.mxu2 %vm1080_vm2, %v5544_v22 }
 0x1fe   : > { %v1262_v61 = vpop.f32.mrf.mxu3 }
 0x1ff   : > { %v1284_v62 = vmul.f32 %v1262_v61, %v5641_v60 }
 0x201   : > { %4164 = vmatmul.msk.f32.gmra.mxu0 %vm1080_vm2, %v1284_v62 }
 0x203   : > { %4147 = vmatmul.msk.f32.gmra.mxu2 %vm1080_vm2, %v5552_v25 }
 0x206   : > { %v1265_v0 = vpop.f32.mrf.mxu3 }
 0x207   : > { %v1285_v1 = vmul.f32 %v1265_v0, %v5648_v63 }
 0x209   : > { %4165 = vmatmul.msk.f32.gmra.mxu0 %vm1080_vm2, %v1285_v1 }
 0x20e   : > { %v1268_v3 = vpop.f32.mrf.mxu3 }
 0x20f   : > { %v1286_v4 = vmul.f32 %v1268_v3, %v5655_v2 }
 0x211   : > { %4166 = vmatmul.msk.f32.gmra.mxu0 %vm1080_vm2, %v1286_v4 }
 0x216   : > { %v1271_v6 = vpop.f32.mrf.mxu3 }
 0x217   : > { %v1287_v7 = vmul.f32 %v1271_v6, %v5662_v5 }
 0x219   : > { %4167 = vmatmul.msk.f32.gmra.mxu0 %vm1080_vm2, %v1287_v7 }
 0x21e   : > { %v1274_v9 = vpop.f32.mrf.mxu3 }
 0x21f   : > { %v1288_v10 = vmul.f32 %v1274_v9, %v5669_v8  ;;  %v1298_v9 = vld [vmem:[%s6360_s24 + $0x40] sm:$0xff] }
 0x221   : > { %4168 = vmatmul.msk.f32.gmra.mxu0 %vm1080_vm2, %v1288_v10 }
 0x226   : > { %v1277_v12 = vpop.f32.mrf.mxu3 }
 0x227   : > { %v1289_v13 = vmul.f32 %v1277_v12, %v5676_v11 }
 0x229   : > { %4169 = vmatmul.msk.f32.gmra.mxu0 %vm1080_vm2, %v1289_v13 }
 0x25e   : > { %v1353_v15 = vpop.f32.mrf.mxu0 }
 0x25f   : > { %v1354_v16 = vadd.f32 %v1353_v15, %v1290_v14 }
 0x261   : > { %v1383_v17 = vsel %vm1202_vm3, %v1354_v16, -inf }
 0x262   : > { %1384 = vmax.xlane.f32.xlu0 %v1383_v17 }
 0x266   : > { %v1356_v19 = vpop.f32.mrf.mxu0 }
 0x267   : > { %v1357_v20 = vadd.f32 %v1356_v19, %v1291_v18  ;;  %v1299_v18 = vld [vmem:[%s6360_s24 + $0x48] sm:$0xff] }
 0x269   : > { %v1386_v21 = vsel %vm1202_vm3, %v1357_v20, -inf }
 0x26a   : > { %1387 = vmax.xlane.f32.xlu0 %v1386_v21 }
 0x26e   : > { %v1359_v24 = vpop.f32.mrf.mxu0 }
 0x26f   : > { %v5691_v26 = vadd.f32 %v1359_v24, %v1292_v23 }
 0x271   : > { %v1389_v27 = vsel %vm1202_vm3, %v5691_v26, -inf }
 0x272   : > { %1390 = vmax.xlane.f32.xlu1 %v1389_v27 }
 0x276   : > { %v1362_v29 = vpop.f32.mrf.mxu0 }
 0x277   : > { %v5698_v30 = vadd.f32 %v1362_v29, %v1293_v28 }
 0x279   : > { %v1392_v31 = vsel %vm1202_vm3, %v5698_v30, -inf }
 0x27a   : > { %1393 = vmax.xlane.f32.xlu1 %v1392_v31 }
 0x27e   : > { %v1365_v36 = vpop.f32.mrf.mxu0 }
 0x27f   : > { %v5709_v38 = vadd.f32 %v1365_v36, %v1294_v34 }
 0x281   : > { %v1395_v40 = vsel %vm1202_vm3, %v5709_v38, -inf }
 0x282   : > { %1396 = vmax.xlane.f32.xlu2 %v1395_v40 }
 0x286   : > { %v1368_v44 = vpop.f32.mrf.mxu0 }
 0x287   : > { %v5719_v45 = vadd.f32 %v1368_v44, %v1295_v42 }
 0x289   : > { %v1398_v46 = vsel %vm1202_vm3, %v5719_v45, -inf }
 0x28a   : > { %1399 = vmax.xlane.f32.xlu2 %v1398_v46 }
 0x28e   : > { %v1371_v49 = vpop.f32.mrf.mxu0 }
 0x28f   : > { %v5726_v50 = vadd.f32 %v1371_v49, %v1296_v47 }
 0x291   : > { %v1401_v52 = vsel %vm1202_vm3, %v5726_v50, -inf }
 0x292   : > { %1402 = vmax.xlane.f32.xlu0 %v1401_v52 }
 0x296   : > { %v1374_v55 = vpop.f32.mrf.mxu0 }
 0x297   : > { %v5733_v56 = vadd.f32 %v1374_v55, %v1297_v53  ;;  %v1174_v55 = vpop.f32.mrf.mxu2 }
 0x299   : > { %v1404_v58 = vsel %vm1202_vm3, %v5733_v56, -inf }
 0x29a   : > { %1405 = vmax.xlane.f32.xlu2 %v1404_v58 }
 0x29e   : > { %v1377_v4 = vpop.f32.mrf.mxu0 }
 0x29f   : > { %v5749_v12 = vadd.f32 %v1377_v4, %v1298_v9  ;;  %v1177_v58 = vpop.f32.mrf.mxu2 }
 0x2a1   : > { %v1407_v15 = vsel %vm1202_vm3, %v5749_v12, -inf }
 0x2a6   : > { %v1380_v19 = vpop.f32.mrf.mxu0 }
 0x2a7   : > { %v5761_v21 = vadd.f32 %v1380_v19, %v1299_v18 }
 0x2d5   : > { %v1385_v61 = vpop.xlane.xlu0 %1384 }
 0x2d6   : > { %v1413_v62 = vsub.f32 %v1354_v16, %v1385_v61 }
 0x2d8   : > { %v1423_v0 = vmul.f32 1.442695, %v1413_v62 }
 0x2da   : > { %5200 = vpow2.f32 %v1423_v0 }
 0x2dd   : > { %v1388_v1 = vpop.xlane.xlu0 %1387 }
 0x2de   : > { %v1414_v3 = vsub.f32 %v1357_v20, %v1388_v1 }
 0x2e0   : > { %v5742_v6 = vpop.eup %5200  ;;  %v1425_v7 = vmul.f32 1.442695, %v1414_v3 }
 0x2e1   : > { %v1443_v10 = vsel %vm1202_vm3, %v5742_v6, 0.0 }
 0x2e2   : > { %5202 = vpow2.f32 %v1425_v7  ;;  %1444 = vadd.xlane.f32.xlu1 %v1443_v10 }
 0x2e5   : > { %v1391_v13 = vpop.xlane.xlu1 %1390 }
 0x2e6   : > { %v1415_v14 = vsub.f32 %v5691_v26, %v1391_v13  ;;  %v1410_v26 = vsel %vm1202_vm3, %v5761_v21, -inf }
 0x2e8   : > { %v5754_v16 = vpop.eup %5202  ;;  %v1427_v17 = vmul.f32 1.442695, %v1415_v14 }
 0x2e9   : > { %v1446_v20 = vsel %vm1202_vm3, %v5754_v16, 0.0 }
 0x2ea   : > { %5204 = vpow2.f32 %v1427_v17  ;;  %1447 = vadd.xlane.f32.xlu0 %v1446_v20  ;;  %1408 = vmax.xlane.f32.xlu1 %v1407_v15 }
 0x2ed   : > { %v1394_v23 = vpop.xlane.xlu1 %1393 }
 0x2ee   : > { %v1416_v24 = vsub.f32 %v5698_v30, %v1394_v23 }
 0x2f0   : > { %v5766_v27 = vpop.eup %5204  ;;  %v1429_v28 = vmul.f32 1.442695, %v1416_v24 }
 0x2f1   : > { %v1449_v29 = vsel %vm1202_vm3, %v5766_v27, 0.0 }
 0x2f2   : > { %5206 = vpow2.f32 %v1429_v28  ;;  %1450 = vadd.xlane.f32.xlu2 %v1449_v29  ;;  %1411 = vmax.xlane.f32.xlu0 %v1410_v26 }
 0x2f5   : > { %v1397_v31 = vpop.xlane.xlu2 %1396 }
 0x2f6   : > { %v1417_v32 = vsub.f32 %v5709_v38, %v1397_v31 }
 0x2f8   : > { %v5771_v33 = vpop.eup %5206  ;;  %v1431_v34 = vmul.f32 1.442695, %v1417_v32 }
 0x2f9   : > { %v1452_v30 = vsel %vm1202_vm3, %v5771_v33, 0.0 }
 0x2fa   : > { %5208 = vpow2.f32 %v1431_v34  ;;  %1453 = vadd.xlane.f32.xlu1 %v1452_v30 }
 0x2fd   : > { %v1400_v35 = vpop.xlane.xlu2 %1399 }
 0x2fe   : > { %v1418_v36 = vsub.f32 %v5719_v45, %v1400_v35 }
 0x300   : > { %v5776_v37 = vpop.eup %5208  ;;  %v1433_v39 = vmul.f32 1.442695, %v1418_v36 }
 0x301   : > { %v1455_v40 = vsel %vm1202_vm3, %v5776_v37, 0.0 }
 0x302   : > { %5210 = vpow2.f32 %v1433_v39  ;;  %1456 = vadd.xlane.f32.xlu2 %v1455_v40 }
 0x305   : > { %v1403_v38 = vpop.xlane.xlu0 %1402 }
 0x306   : > { %v1419_v41 = vsub.f32 %v5726_v50, %v1403_v38 }
 0x308   : > { %v5781_v42 = vpop.eup %5210  ;;  %v1435_v43 = vmul.f32 1.442695, %v1419_v41 }
 0x309   : > { %v1458_v44 = vsel %vm1202_vm3, %v5781_v42, 0.0 }
 0x30a   : > { %5212 = vpow2.f32 %v1435_v43  ;;  %1459 = vadd.xlane.f32.xlu0 %v1458_v44 }
 0x30d   : > { %v1406_v45 = vpop.xlane.xlu2 %1405 }
 0x30e   : > { %v1420_v46 = vsub.f32 %v5733_v56, %v1406_v45  ;;  %v5193_v56 = vld [vmem:[%s6363_s26] ss:$0 sm:$0xff]  ;;  %s6366_s26 = scalar_lea.vmem %s6365_s25, %s5440_s7 }
 0x30f   : > { %v1175_v59 = vadd.f32 %v5193_v56, %v1174_v55  ;;  %v1178_v61 = vadd.f32 %v5193_v56, %v1177_v58 }
 0x310   : > { %v5786_v47 = vpop.eup %5212  ;;  %v1437_v49 = vmul.f32 1.442695, %v1420_v46 }
 0x311   : > { %v1461_v52 = vsel %vm1202_vm3, %v5786_v47, 0.0  ;;  %1667 = vmatpush.msrb.mxu1 %v1178_v61 }
 0x312   : > { %5214 = vpow2.f32 %v1437_v49  ;;  %1462 = vadd.xlane.f32.xlu1 %v1461_v52 }
 0x313   : > { %1668 = vmatpush.msrb.mxu1 %v1175_v59 }
 0x318   : > { %v5790_v50 = vpop.eup %5214 }
 0x319   : > { %v1464_v53 = vsel %vm1202_vm3, %v5790_v50, 0.0 }
 0x31a   : > { %1465 = vadd.xlane.f32.xlu2 %v1464_v53 }
 0x355   : > { %v1445_v62 = vpop.xlane.xlu1 %1444 }
 0x356   : > { %5216 = vrcp.f32 %v1445_v62  ;;  %v1484_v14 = vand.u32 2147483648, %v1445_v62  ;;  %v1482_v15 = vand.u32 2147483647, %v1445_v62  ;;  %vm1478_vm5 = vweird.f32 %v1445_v62 }
 0x358   : > { %v1485_v19 = vor.u32 1.1754944e-38, %v1484_v14  ;;  %vm1483_vm7 = vcmp.eq.f32.partialorder %v1482_v15, 8.507059e+37 }
 0x35c   : > { %v5217_v0 = vpop.eup %5216 }
 0x35d   : > { %v1474_v1 = vmul.f32 %v5217_v0, %v1445_v62  ;;  %v1448_v3 = vpop.xlane.xlu0 %1447  ;;  %v1409_v4 = vpop.xlane.xlu1 %1408  ;;  %vm1479_vm4 = vweird.f32 %v5217_v0 }
 0x35e   : > { %5218 = vrcp.f32 %v1448_v3  ;;  %v1421_v7 = vsub.f32 %v5749_v12, %v1409_v4  ;;  %vm1480_vm6 = vmor %vm1478_vm5, %vm1479_vm4  ;;  %v1499_v32 = vand.u32 2147483648, %v1448_v3  ;;  %v1497_v39 = vand.u32 2147483647, %v1448_v3 }
 0x35f   : > { %v1475_v9 = vsub.f32 1.0, %v1474_v1  ;;  %vm1493_vm9 = vweird.f32 %v1448_v3 }
 0x360   : > { %v1439_v10 = vmul.f32 1.442695, %v1421_v7  ;;  %v1500_v38 = vor.u32 1.1754944e-38, %v1499_v32  ;;  %vm1498_vm11 = vcmp.eq.f32.partialorder %v1497_v39, 8.507059e+37 }
 0x361   : > { %v1476_v13 = vmul.f32 %v5217_v0, %v1475_v9 }
 0x362   : > { %5220 = vpow2.f32 %v1439_v10 }
 0x363   : > { %v1477_v17 = vadd.f32 %v5217_v0, %v1476_v13 }
 0x364   : > { %v5219_v18 = vpop.eup %5218 }
 0x365   : > { %v1489_v20 = vmul.f32 %v5219_v18, %v1448_v3  ;;  %v1451_v23 = vpop.xlane.xlu2 %1450  ;;  %v1412_v24 = vpop.xlane.xlu0 %1411  ;;  %v1481_v26 = vsel %vm1480_vm6, %v5217_v0, %v1477_v17  ;;  %vm1494_vm8 = vweird.f32 %v5219_v18 }
 0x366   : > { %5222 = vrcp.f32 %v1451_v23  ;;  %v1422_v12 = vsub.f32 %v5761_v21, %v1412_v24  ;;  %v1486_v29 = vsel %vm1483_vm7, %v1485_v19, %v1481_v26  ;;  %vm1495_vm10 = vmor %vm1493_vm9, %vm1494_vm8  ;;  %v1514_v52 = vand.u32 2147483648, %v1451_v23 }
 0x367   : > { %v1490_v28 = vsub.f32 1.0, %v1489_v20  ;;  %v1487_v30 = vmul.f32 %v5742_v6, %v1486_v29  ;;  %v1512_v56 = vand.u32 2147483647, %v1451_v23  ;;  %vm1508_vm13 = vweird.f32 %v1451_v23 }
 0x368   : > { %v5801_v31 = vpop.eup %5220  ;;  %v1441_v34 = vmul.f32 1.442695, %v1422_v12  ;;  %v1515_v61 = vor.u32 1.1754944e-38, %v1514_v52 }
 0x369   : > { %v1491_v35 = vmul.f32 %v5219_v18, %v1490_v28  ;;  %v1467_v36 = vsel %vm1202_vm3, %v5801_v31, 0.0  ;;  %4170 = vmatmul.msk.f32.vlgmr.msrb.gmra.mxu1 %vm1202_vm3, %v1487_v30  ;;  %vm1513_vm15 = vcmp.eq.f32.partialorder %v1512_v56, 8.507059e+37 }
 0x36a   : > { %5224 = vpow2.f32 %v1441_v34  ;;  %1468 = vadd.xlane.f32.xlu0 %v1467_v36 }
 0x36b   : > { %v1492_v21 = vadd.f32 %v5219_v18, %v1491_v35 }
 0x36c   : > { %v5223_v40 = vpop.eup %5222 }
 0x36d   : > { %v1504_v41 = vmul.f32 %v5223_v40, %v1451_v23  ;;  %v1454_v43 = vpop.xlane.xlu1 %1453  ;;  %v1496_v44 = vsel %vm1495_vm10, %v5219_v18, %v1492_v21  ;;  %vm1509_vm12 = vweird.f32 %v5223_v40 }
 0x36e   : > { %5226 = vrcp.f32 %v1454_v43  ;;  %v1501_v6 = vsel %vm1498_vm11, %v1500_v38, %v1496_v44  ;;  %vm1510_vm14 = vmor %vm1508_vm13, %vm1509_vm12  ;;  %v1529_v7 = vand.u32 2147483648, %v1454_v43  ;;  %v1527_v10 = vand.u32 2147483647, %v1454_v43 }
 0x36f   : > { %v1505_v45 = vsub.f32 1.0, %v1504_v41  ;;  %v1502_v46 = vmul.f32 %v5754_v16, %v1501_v6  ;;  %vm1523_vm1 = vweird.f32 %v1454_v43 }
 0x370   : > { %v5808_v49 = vpop.eup %5224  ;;  %v1530_v15 = vor.u32 1.1754944e-38, %v1529_v7  ;;  %vm1528_vm5 = vcmp.eq.f32.partialorder %v1527_v10, 8.507059e+37 }
 0x371   : > { %v1506_v53 = vmul.f32 %v5223_v40, %v1505_v45  ;;  %v1470_v55 = vsel %vm1202_vm3, %v5808_v49, 0.0  ;;  %4171 = vmatmul.msk.f32.gmra.mxu1 %vm1202_vm3, %v1502_v46 }
 0x372   : > { %1471 = vadd.xlane.f32.xlu1 %v1470_v55 }
 0x373   : > { %v1507_v58 = vadd.f32 %v5223_v40, %v1506_v53 }
 0x374   : > { %v5227_v59 = vpop.eup %5226 }
 0x375   : > { %v1519_v62 = vmul.f32 %v5227_v59, %v1454_v43  ;;  %v1457_v0 = vpop.xlane.xlu2 %1456  ;;  %v1511_v16 = vsel %vm1510_vm14, %v5223_v40, %v1507_v58  ;;  %vm1524_vm0 = vweird.f32 %v5227_v59 }
 0x376   : > { %5228 = vrcp.f32 %v1457_v0  ;;  %v1516_v1 = vsel %vm1513_vm15, %v1515_v61, %v1511_v16  ;;  %vm1525_vm4 = vmor %vm1523_vm1, %vm1524_vm0  ;;  %v1544_v24 = vand.u32 2147483648, %v1457_v0  ;;  %v1542_v12 = vand.u32 2147483647, %v1457_v0 }
 0x377   : > { %v1520_v3 = vsub.f32 1.0, %v1519_v62  ;;  %v1517_v4 = vmul.f32 %v5766_v27, %v1516_v1  ;;  %vm1538_vm7 = vweird.f32 %v1457_v0 }
 0x378   : > { %v1545_v32 = vor.u32 1.1754944e-38, %v1544_v24  ;;  %vm1543_vm9 = vcmp.eq.f32.partialorder %v1542_v12, 8.507059e+37 }
 0x379   : > { %v1521_v9 = vmul.f32 %v5227_v59, %v1520_v3  ;;  %4172 = vmatmul.msk.f32.gmra.mxu1 %vm1202_vm3, %v1517_v4 }
 0x37b   : > { %v1522_v13 = vadd.f32 %v5227_v59, %v1521_v9 }
 0x37c   : > { %v5229_v14 = vpop.eup %5228 }
 0x37d   : > { %v1534_v17 = vmul.f32 %v5229_v14, %v1457_v0  ;;  %v1460_v18 = vpop.xlane.xlu0 %1459  ;;  %v1526_v19 = vsel %vm1525_vm4, %v5227_v59, %v1522_v13  ;;  %vm1539_vm6 = vweird.f32 %v5229_v14 }
 0x37e   : > { %5230 = vrcp.f32 %v1460_v18  ;;  %v1531_v20 = vsel %vm1528_vm5, %v1530_v15, %v1526_v19  ;;  %vm1540_vm8 = vmor %vm1538_vm7, %vm1539_vm6  ;;  %v1559_v21 = vand.u32 2147483648, %v1460_v18  ;;  %v1557_v38 = vand.u32 2147483647, %v1460_v18 }
 0x37f   : > { %v1535_v23 = vsub.f32 1.0, %v1534_v17  ;;  %v1532_v27 = vmul.f32 %v5771_v33, %v1531_v20  ;;  %vm1553_vm11 = vweird.f32 %v1460_v18 }
 0x380   : > { %v1560_v44 = vor.u32 1.1754944e-38, %v1559_v21  ;;  %vm1558_vm13 = vcmp.eq.f32.partialorder %v1557_v38, 8.507059e+37 }
 0x381   : > { %v1536_v26 = vmul.f32 %v5229_v14, %v1535_v23  ;;  %4173 = vmatmul.msk.f32.gmra.mxu1 %vm1202_vm3, %v1532_v27 }
 0x383   : > { %v1537_v28 = vadd.f32 %v5229_v14, %v1536_v26 }
 0x384   : > { %v5231_v29 = vpop.eup %5230 }
 0x385   : > { %v1549_v34 = vmul.f32 %v5231_v29, %v1460_v18  ;;  %v1463_v30 = vpop.xlane.xlu1 %1462  ;;  %v1541_v35 = vsel %vm1540_vm8, %v5229_v14, %v1537_v28  ;;  %vm1554_vm10 = vweird.f32 %v5231_v29 }
 0x386   : > { %5232 = vrcp.f32 %v1463_v30  ;;  %v1546_v36 = vsel %vm1543_vm9, %v1545_v32, %v1541_v35  ;;  %vm1555_vm12 = vmor %vm1553_vm11, %vm1554_vm10  ;;  %v1574_v55 = vand.u32 2147483648, %v1463_v30  ;;  %v1572_v58 = vand.u32 2147483647, %v1463_v30 }
 0x387   : > { %v1550_v39 = vsub.f32 1.0, %v1549_v34  ;;  %v1547_v33 = vmul.f32 %v5776_v37, %v1546_v36  ;;  %vm1568_vm15 = vweird.f32 %v1463_v30 }
 0x388   : > { %v1575_v62 = vor.u32 1.1754944e-38, %v1574_v55  ;;  %vm1573_vm1 = vcmp.eq.f32.partialorder %v1572_v58, 8.507059e+37 }
 0x389   : > { %v1551_v40 = vmul.f32 %v5231_v29, %v1550_v39  ;;  %4174 = vmatmul.msk.f32.gmra.mxu1 %vm1202_vm3, %v1547_v33 }
 0x38b   : > { %v1552_v41 = vadd.f32 %v5231_v29, %v1551_v40 }
 0x38c   : > { %v5233_v43 = vpop.eup %5232 }
 0x38d   : > { %v1564_v6 = vmul.f32 %v5233_v43, %v1463_v30  ;;  %v1466_v45 = vpop.xlane.xlu2 %1465  ;;  %v1556_v46 = vsel %vm1555_vm12, %v5231_v29, %v1552_v41  ;;  %vm1569_vm14 = vweird.f32 %v5233_v43 }
 0x38e   : > { %5234 = vrcp.f32 %v1466_v45  ;;  %v1561_v52 = vsel %vm1558_vm13, %v1560_v44, %v1556_v46  ;;  %vm1570_vm0 = vmor %vm1568_vm15, %vm1569_vm14  ;;  %v1589_v7 = vand.u32 2147483648, %v1466_v45  ;;  %v1587_v9 = vand.u32 2147483647, %v1466_v45 }
 0x38f   : > { %v1565_v53 = vsub.f32 1.0, %v1564_v6  ;;  %v1562_v37 = vmul.f32 %v5781_v42, %v1561_v52  ;;  %vm1583_vm5 = vweird.f32 %v1466_v45 }
 0x390   : > { %v1590_v13 = vor.u32 1.1754944e-38, %v1589_v7  ;;  %vm1588_vm7 = vcmp.eq.f32.partialorder %v1587_v9, 8.507059e+37  ;;  %v5194_v9 = vld [vmem:[%s6366_s26] ss:$0 sm:$0xff]  ;;  %s6369_s26 = sld [smem:[#allocation21_spill]] (!%p4968_p5) }
 0x391   : > { %v1566_v56 = vmul.f32 %v5233_v43, %v1565_v53  ;;  %4175 = vmatmul.msk.f32.gmra.mxu1 %vm1202_vm3, %v1562_v37 }
 0x393   : > { %v1567_v59 = vadd.f32 %v5233_v43, %v1566_v56 }
 0x394   : > { %v5235_v61 = vpop.eup %5234 }
 0x395   : > { %v1579_v0 = vmul.f32 %v5235_v61, %v1466_v45  ;;  %v1571_v16 = vsel %vm1570_vm0, %v5233_v43, %v1567_v59  ;;  %vm1584_vm4 = vweird.f32 %v5235_v61  ;;  %vm1712_vm0 = vcmask 654336  }
 0x396   : > { %v1576_v1 = vsel %vm1573_vm1, %v1575_v62, %v1571_v16  ;;  %vm1585_vm6 = vmor %vm1583_vm5, %vm1584_vm4  ;;  %v1745_v16 = vld [vmem:[%s5473_s6 + $0x18] sm:$0xff] }
 0x397   : > { %v1580_v3 = vsub.f32 1.0, %v1579_v0  ;;  %v1577_v4 = vmul.f32 %v5786_v47, %v1576_v1  ;;  %v1744_v1 = vld [vmem:[%s5473_s6 + $0x10] sm:$0xff] }
 0x399   : > { %v1581_v42 = vmul.f32 %v5235_v61, %v1580_v3  ;;  %4176 = vmatmul.msk.f32.gmra.mxu1 %vm1202_vm3, %v1577_v4  ;;  %v1743_v3 = vld [vmem:[%s5473_s6 + $0x8] sm:$0xff]  ;;  %v1742_v4 = vld [vmem:[%s5473_s6] sm:$0xff] }
 0x39b   : > { %v1582_v10 = vadd.f32 %v5235_v61, %v1581_v42 }
 0x39d   : > { %v1586_v14 = vsel %vm1585_vm6, %v5235_v61, %v1582_v10 }
 0x39e   : > { %v1591_v15 = vsel %vm1588_vm7, %v1590_v13, %v1586_v14 }
 0x39f   : > { %v1592_v17 = vmul.f32 %v5790_v50, %v1591_v15 }
 0x3a1   : > { %4177 = vmatmul.msk.f32.gmra.mxu1 %vm1202_vm3, %v1592_v17 }
 0x3dd   : > { %v1469_v18 = vpop.xlane.xlu0 %1468 }
 0x3de   : > { %5236 = vrcp.f32 %v1469_v18  ;;  %v1604_v27 = vand.u32 2147483648, %v1469_v18  ;;  %v1602_v26 = vand.u32 2147483647, %v1469_v18  ;;  %vm1598_vm9 = vweird.f32 %v1469_v18 }
 0x3e0   : > { %v1605_v29 = vor.u32 1.1754944e-38, %v1604_v27  ;;  %vm1603_vm11 = vcmp.eq.f32.partialorder %v1602_v26, 8.507059e+37  ;;  %v5038_v26 = vld [vmem:[%s5483_s5 + $0x1c4] sm:$0xf0] }
 0x3e4   : > { %v5237_v47 = vpop.eup %5236 }
 0x3e5   : > { %v1594_v19 = vmul.f32 %v5237_v47, %v1469_v18  ;;  %v1472_v20 = vpop.xlane.xlu1 %1471  ;;  %vm1599_vm8 = vweird.f32 %v5237_v47 }
 0x3e6   : > { %5238 = vrcp.f32 %v1472_v20  ;;  %vm1600_vm10 = vmor %vm1598_vm9, %vm1599_vm8  ;;  %v1619_v36 = vand.u32 2147483648, %v1472_v20  ;;  %v1617_v33 = vand.u32 2147483647, %v1472_v20  ;;  %vm1613_vm13 = vweird.f32 %v1472_v20  ;;  %v1670_v44 = vpop.f32.mrf.mxu1 }
 0x3e7   : > { %v1595_v23 = vsub.f32 1.0, %v1594_v19 }
 0x3e8   : > { %v1620_v40 = vor.u32 1.1754944e-38, %v1619_v36  ;;  %vm1618_vm15 = vcmp.eq.f32.partialorder %v1617_v33, 8.507059e+37 }
 0x3e9   : > { %v1596_v24 = vmul.f32 %v5237_v47, %v1595_v23 }
 0x3eb   : > { %v1597_v12 = vadd.f32 %v5237_v47, %v1596_v24  ;;  %v4386_v24 = vld [vmem:[%s5483_s5 + $0x188] sm:$0xf] }
 0x3ec   : > { %v5239_v28 = vpop.eup %5238 }
 0x3ed   : > { %v1609_v32 = vmul.f32 %v5239_v28, %v1472_v20  ;;  %v1601_v50 = vsel %vm1600_vm10, %v5237_v47, %v1597_v12  ;;  %vm1614_vm12 = vweird.f32 %v5239_v28  ;;  %v5291_v20 = vmov 64.0  }
 0x3ee   : > { %v1606_v34 = vsel %vm1603_vm11, %v1605_v29, %v1601_v50  ;;  %vm1615_vm14 = vmor %vm1613_vm13, %vm1614_vm12  ;;  %v1673_v6 = vpop.f32.mrf.mxu1  ;;  %5240 = vrcp.f32 %v5291_v20  ;;  %v4387_v12 = vor.u32 %v5038_v26, %v4386_v24  ;;  %v4210_v20 = vld [vmem:[%s5483_s5 + $0x18] sm:$0xf]  ;;  %v5029_v26 = vld [vmem:[%s5483_s5 + $0x184] sm:$0xf] }
 0x3ef   : > { %v1610_v30 = vsub.f32 1.0, %v1609_v32  ;;  %v1607_v35 = vmul.f32 %v5801_v31, %v1606_v34 }
 0x3f0   : > { %2304 = vmatpush.bf16.msrb.mxu3 %v4387_v12  ;;  %v4380_v12 = vld [vmem:[%s5483_s5 + $0x1c0] sm:$0xf0] }
 0x3f1   : > { %v1611_v39 = vmul.f32 %v5239_v28, %v1610_v30  ;;  %4178 = vmatmul.msk.f32.gmra.mxu1 %vm1202_vm3, %v1607_v35 }
 0x3f3   : > { %v1612_v21 = vadd.f32 %v5239_v28, %v1611_v39 }
 0x3f4   : > { %v5241_v23 = vpop.eup %5240 }
 0x3f5   : > { %v1616_v38 = vsel %vm1615_vm14, %v5239_v28, %v1612_v21  ;;  %v1794_v27 = vmul.f32 64.0, %v5241_v23  ;;  %vm1798_vm1 = vweird.f32 %v5241_v23 }
 0x3f6   : > { %v1621_v41 = vsel %vm1618_vm15, %v1620_v40, %v1616_v38  ;;  %v1676_v31 = vpop.f32.mrf.mxu1  ;;  %v4378_v38 = vld [vmem:[%s5483_s5 + $0x180] sm:$0xf] }
 0x3f7   : > { %v1622_v43 = vmul.f32 %v5808_v49, %v1621_v41  ;;  %v1795_v28 = vsub.f32 1.0, %v1794_v27  ;;  %v5037_v41 = vld [vmem:[%s5483_s5 + $0x1bc] sm:$0xf0] }
 0x3f9   : > { %4179 = vmatmul.msk.f32.gmra.mxu1 %vm1202_vm3, %v1622_v43  ;;  %v5031_v43 = vld [vmem:[%s5483_s5 + $0x194] sm:$0xf] }
 0x3fe   : > { %v1679_v45 = vpop.f32.mrf.mxu1 }
 0x406   : > { %v1682_v46 = vpop.f32.mrf.mxu1 }
 0x407   : > { %v1704_v0 = vmul.f32 %v1682_v46, %v5641_v60  ;;  %v1710_v60 = vld [vmem:[%s6364_s29] sm:$0xff] }
 0x40e   : > { %v1685_v52 = vpop.f32.mrf.mxu1 }
 0x40f   : > { %v1705_v62 = vmul.f32 %v1685_v52, %v5648_v63  ;;  %v1747_v63 = vld [vmem:[%s5473_s6 + $0x28] sm:$0xff] }
 0x416   : > { %v1688_v53 = vpop.f32.mrf.mxu1 }
 0x417   : > { %v1706_v49 = vmul.f32 %v1688_v53, %v5655_v2  ;;  %v1700_v2 = vmul.f32 %v1670_v44, %v5613_v48  ;;  %v1711_v48 = vld [vmem:[%s6364_s29 + $0x8] sm:$0xff]  ;;  %v4379_v44 = vor.u32 %v5037_v41, %v4378_v38 }
 0x418   : > { %v4322_v53 = vld [vmem:[%s5483_s5 + $0x108] sm:$0xf] }
 0x41e   : > { %v1691_v37 = vpop.f32.mrf.mxu1 }
 0x41f   : > { %v1707_v61 = vmul.f32 %v1691_v37, %v5662_v5  ;;  %v1701_v5 = vmul.f32 %v1673_v6, %v5620_v51  ;;  %v1746_v51 = vld [vmem:[%s5473_s6 + $0x20] sm:$0xff]  ;;  %v4396_v6 = vld [vmem:[%s5483_s5 + $0x1d0] sm:$0xf0]  ;;  %v5022_v37 = vld [vmem:[%s5483_s5 + $0x144] sm:$0xf0] }
 0x420   : > { %v4399_v46 = vor.u32 %v5031_v43, %v4396_v6  ;;  %v4316_v43 = vld [vmem:[%s5483_s5 + $0x140] sm:$0xf0]  ;;  %v5023_v6 = vld [vmem:[%s5483_s5 + $0x14c] sm:$0xf0] }
 0x422   : > { %2346 = vmatpush.bf16.msra.mxu0 %v4399_v46  ;;  %v5017_v46 = vld [vmem:[%s5483_s5 + $0x124] sm:$0xf] }
 0x46e   : > { %v1694_v55 = vpop.f32.mrf.mxu1 }
 0x46f   : > { %v1708_v59 = vmul.f32 %v1694_v55, %v5669_v8  ;;  %v1702_v8 = vmul.f32 %v1676_v31, %v5627_v54  ;;  %v1748_v54 = vld [vmem:[%s5473_s6 + $0x30] sm:$0xff]  ;;  %v4402_v31 = vld [vmem:[%s5483_s5 + $0x198] sm:$0xf]  ;;  %v4314_v55 = vld [vmem:[%s5483_s5 + $0x100] sm:$0xf] }
 0x476   : > { %v1697_v56 = vpop.f32.mrf.mxu1 }
 0x477   : > { %v1709_v58 = vmul.f32 %v1697_v56, %v5676_v11  ;;  %v1703_v11 = vmul.f32 %v1679_v45, %v5634_v57  ;;  %v1749_v57 = vld [vmem:[%s5473_s6 + $0x38] sm:$0xff]  ;;  %v4323_v56 = vor.u32 %v5022_v37, %v4322_v53  ;;  %v4354_v53 = vld [vmem:[%s5483_s5 + $0x128] sm:$0xf]  ;;  %s6370_s6 = sld [smem:[#allocation22_spill]] (!%p4968_p5) }
 0x478   : > { %v5040_v45 = vld [vmem:[%s5483_s5 + $0x1d4] sm:$0xf0] }
 0x479   : > { %1725 = vmatpush.msrb.mxu2 %v1709_v58  ;;  %v4403_v52 = vor.u32 %v5040_v45, %v4402_v31  ;;  %v5021_v58 = vld [vmem:[%s5483_s5 + $0x13c] sm:$0xf0]  ;;  %2305 = vmatpush.bf16.msrb.mxu3 %v4323_v56 }
 0x47b   : > { %1726 = vmatpush.msrb.mxu2 %v1708_v59  ;;  %2360 = vmatpush.bf16.msra.mxu1 %v4403_v52  ;;  %v5015_v59 = vld [vmem:[%s5483_s5 + $0x114] sm:$0xf]  ;;  %v4348_v52 = vld [vmem:[%s5483_s5 + $0x160] sm:$0xf0] }
 0x47c   : > { %v4351_v56 = vor.u32 %v5017_v46, %v4348_v52  ;;  %v5014_v52 = vld [vmem:[%s5483_s5 + $0x10c] sm:$0xf] }
 0x47d   : > { %1727 = vmatpush.msrb.mxu2 %v1707_v61  ;;  %v4332_v61 = vld [vmem:[%s5483_s5 + $0x150] sm:$0xf0] }
 0x47f   : > { %1728 = vmatpush.msrb.mxu2 %v1706_v49  ;;  %v4315_v49 = vor.u32 %v5021_v58, %v4314_v55  ;;  %v5026_v58 = vld [vmem:[%s5483_s5 + $0x164] sm:$0xf0] }
 0x481   : > { %1729 = vmatpush.msrb.mxu2 %v1705_v62  ;;  %v4335_v62 = vor.u32 %v5015_v59, %v4332_v61  ;;  %v4997_v59 = vld [vmem:[%s5483_s5 + $0x84] sm:$0xf] }
 0x483   : > { %1730 = vmatpush.msrb.mxu2 %v1704_v0  ;;  %v4338_v0 = vld [vmem:[%s5483_s5 + $0x118] sm:$0xf]  ;;  %2347 = vmatpush.bf16.msra.mxu0 %v4335_v62  ;;  %v4252_v62 = vld [vmem:[%s5483_s5 + $0xc0] sm:$0xf0] }
 0x485   : > { %1731 = vmatpush.msrb.mxu2 %v1703_v11  ;;  %v5024_v11 = vld [vmem:[%s5483_s5 + $0x154] sm:$0xf0] }
 0x487   : > { %1732 = vmatpush.msrb.mxu2 %v1702_v8  ;;  %v4339_v8 = vor.u32 %v5024_v11, %v4338_v0  ;;  %v4266_v0 = vld [vmem:[%s5483_s5 + $0x90] sm:$0xf] }
 0x488   : > { %v5007_v11 = vld [vmem:[%s5483_s5 + $0xcc] sm:$0xf0] }
 0x489   : > { %1733 = vmatpush.msrb.mxu2 %v1701_v5  ;;  %v4250_v5 = vld [vmem:[%s5483_s5 + $0x80] sm:$0xf]  ;;  %2361 = vmatpush.bf16.msra.mxu1 %v4339_v8  ;;  %v4255_v8 = vor.u32 %v4997_v59, %v4252_v62  ;;  %v5019_v59 = vld [vmem:[%s5483_s5 + $0x134] sm:$0xf]  ;;  %v5028_v62 = vld [vmem:[%s5483_s5 + $0x174] sm:$0xf0] }
 0x48b   : > { %1734 = vmatpush.msrb.mxu2 %v1700_v2  ;;  %v5005_v2 = vld [vmem:[%s5483_s5 + $0xbc] sm:$0xf0] }
 0x48c   : > { %4180 = vmatmul.msk.f32.vlgmr.msrb.gmra.mxu2 %vm1712_vm0, %v1710_v60  ;;  %v4258_v60 = vld [vmem:[%s5483_s5 + $0x88] sm:$0xf] }
 0x48d   : > { %1768 = vmatpush.msra.mxu2 %v1749_v57  ;;  %v4251_v57 = vor.u32 %v5005_v2, %v4250_v5  ;;  %v5001_v5 = vld [vmem:[%s5483_s5 + $0xa4] sm:$0xf] }
 0x48e   : > { %v4284_v2 = vld [vmem:[%s5483_s5 + $0xe0] sm:$0xf0] }
 0x48f   : > { %1769 = vmatpush.msra.mxu2 %v1748_v54  ;;  %v5006_v54 = vld [vmem:[%s5483_s5 + $0xc4] sm:$0xf0] }
 0x491   : > { %1770 = vmatpush.msra.mxu2 %v1747_v63  ;;  %v4999_v63 = vld [vmem:[%s5483_s5 + $0x94] sm:$0xf] }
 0x493   : > { %1771 = vmatpush.msra.mxu2 %v1746_v51  ;;  %v4268_v51 = vld [vmem:[%s5483_s5 + $0xd0] sm:$0xf0] }
 0x494   : > { %4181 = vmatmul.msk.f32.gmra.mxu2 %vm1712_vm0, %v1711_v48 }
 0x495   : > { %1772 = vmatpush.msra.mxu2 %v1745_v16  ;;  %v4259_v16 = vor.u32 %v5006_v54, %v4258_v60  ;;  %v4287_v54 = vor.u32 %v5001_v5, %v4284_v2  ;;  %v4260_v5 = vld [vmem:[%s5483_s5 + $0xc8] sm:$0xf0] }
 0x497   : > { %1773 = vmatpush.msra.mxu2 %v1744_v1  ;;  %v4271_v1 = vor.u32 %v4999_v63, %v4268_v51  ;;  %2306 = vmatpush.bf16.msrb.mxu3 %v4259_v16  ;;  %v4290_v63 = vld [vmem:[%s5483_s5 + $0xa8] sm:$0xf] }
 0x498   : > { %v5010_v51 = vld [vmem:[%s5483_s5 + $0xe4] sm:$0xf0] }
 0x499   : > { %1774 = vmatpush.msra.mxu2 %v1743_v3  ;;  %v4274_v3 = vld [vmem:[%s5483_s5 + $0x98] sm:$0xf]  ;;  %2348 = vmatpush.bf16.msra.mxu0 %v4271_v1  ;;  %v4291_v16 = vor.u32 %v5010_v51, %v4290_v63  ;;  %v4188_v1 = vld [vmem:[%s5483_s5 + $0x40] sm:$0xf0]  ;;  %v5003_v63 = vld [vmem:[%s5483_s5 + $0xb4] sm:$0xf] }
 0x49a   : > { %v4300_v51 = vld [vmem:[%s5483_s5 + $0xf0] sm:$0xf0] }
 0x49b   : > { %1775 = vmatpush.msra.mxu2 %v1742_v4  ;;  %v5008_v4 = vld [vmem:[%s5483_s5 + $0xd4] sm:$0xf0] }
 0x49d   : > { %2276 = vmatpush.bf16.msrb.mxu2 %v4379_v44  ;;  %v4330_v44 = vld [vmem:[%s5483_s5 + $0x110] sm:$0xf] }
 0x49e   : > { %v4331_v45 = vor.u32 %v5023_v6, %v4330_v44  ;;  %v4428_v44 = vld [vmem:[%s5483_s5 + $0x1f0] sm:$0xf0]  ;;  %v4434_v6 = vld [vmem:[%s5483_s5 + $0x1b8] sm:$0xf] }
 0x4a1   : > { %2277 = vmatpush.bf16.msrb.mxu2 %v4315_v49  ;;  %v4355_v49 = vor.u32 %v5026_v58, %v4354_v53  ;;  %v4324_v53 = vld [vmem:[%s5483_s5 + $0x148] sm:$0xf0]  ;;  %v5025_v58 = vld [vmem:[%s5483_s5 + $0x15c] sm:$0xf0] }
 0x4a5   : > { %2278 = vmatpush.bf16.msrb.mxu2 %v4251_v57  ;;  %v4267_v57 = vor.u32 %v5007_v11, %v4266_v0  ;;  %v4327_v0 = vor.u32 %v5014_v52, %v4324_v53 }
 0x50f   : > { %v1736_v7 = vpop.f32.mrf.mxu2 }
 0x510   : > { %4182 = vmatmul.msk.f32.vlgmr.msra.gmra.mxu2 %vm1080_vm2, %v1736_v7 }
 0x517   : > { %v1739_v42 = vpop.f32.mrf.mxu2 }
 0x518   : > { %4183 = vmatmul.msk.f32.gmra.mxu2 %vm1080_vm2, %v1739_v42  ;;  %v4275_v42 = vor.u32 %v5008_v4, %v4274_v3  ;;  %v4202_v3 = vld [vmem:[%s5483_s5 + $0x10] sm:$0xf] }
 0x519   : > { %v4991_v4 = vld [vmem:[%s5483_s5 + $0x4c] sm:$0xf0] }
 0x51a   : > { %2362 = vmatpush.bf16.msra.mxu1 %v4275_v42  ;;  %v4985_v42 = vld [vmem:[%s5483_s5 + $0x24] sm:$0xf] }
 0x593   : > { %v1777_v10 = vpop.f32.mrf.mxu2 }
 0x594   : > { %v1778_v13 = vadd.f32 %v5194_v9, %v1777_v10  ;;  %v4989_v10 = vld [vmem:[%s5483_s5 + $0x3c] sm:$0xf0] }
 0x596   : > { %v1783_v14 = vadd.f32 %v1778_v13, %v5544_v22  ;;  %v1796_v22 = vmul.f32 %v5241_v23, %v1795_v28  ;;  %v4194_v13 = vld [vmem:[%s5483_s5 + $0x8] sm:$0xf]  ;;  %v4394_v28 = vld [vmem:[%s5483_s5 + $0x190] sm:$0xf] }
 0x598   : > { %v1787_v15 = vsel %vm1080_vm2, %v1783_v14, 0.0  ;;  %v1797_v29 = vadd.f32 %v5241_v23, %v1796_v22  ;;  %v4383_v22 = vor.u32 %v5029_v26, %v4380_v12 }
 0x599   : > { %1788 = vadd.xlane.f32.xlu2 %v1787_v15 }
 0x59a   : > { %v5866_v32 = vsel %vm1798_vm1, %v5241_v23, %v1797_v29  ;;  %v4992_v23 = vld [vmem:[%s5483_s5 + $0x54] sm:$0xf0]  ;;  %v5039_v29 = vld [vmem:[%s5483_s5 + $0x1cc] sm:$0xf0] }
 0x59b   : > { %v1780_v17 = vpop.f32.mrf.mxu2  ;;  %v4211_v24 = vor.u32 %v4992_v23, %v4210_v20 }
 0x59c   : > { %v1781_v18 = vadd.f32 %v5194_v9, %v1780_v17  ;;  %v4186_v9 = vld [vmem:[%s5483_s5] sm:$0xf]  ;;  %v4990_v17 = vld [vmem:[%s5483_s5 + $0x44] sm:$0xf0] }
 0x59d   : > { %v4187_v15 = vor.u32 %v4989_v10, %v4186_v9  ;;  %2363 = vmatpush.bf16.msra.mxu1 %v4211_v24  ;;  %v4220_v9 = vld [vmem:[%s5483_s5 + $0x60] sm:$0xf0] }
 0x59e   : > { %v1784_v47 = vadd.f32 %v1781_v18, %v5552_v25  ;;  %v4983_v18 = vld [vmem:[%s5483_s5 + $0x14] sm:$0xf] }
 0x59f   : > { %2279 = vmatpush.bf16.msrb.mxu2 %v4187_v15  ;;  %v4994_v15 = vld [vmem:[%s5483_s5 + $0x64] sm:$0xf0] }
 0x5a0   : > { %v1790_v19 = vsel %vm1080_vm2, %v1784_v47, 0.0 }
 0x5a1   : > { %1791 = vadd.xlane.f32.xlu0 %v1790_v19  ;;  %v4204_v19 = vld [vmem:[%s5483_s5 + $0x50] sm:$0xf0] }
 0x5a2   : > { %v4207_v27 = vor.u32 %v4983_v18, %v4204_v19  ;;  %v4203_v18 = vor.u32 %v4991_v4, %v4202_v3  ;;  %v4982_v4 = vld [vmem:[%s5483_s5 + $0xc] sm:$0xf] }
 0x5a3   : > { %2290 = vmatpush.bf16.msra.mxu2 %v4383_v22 }
 0x5a4   : > { %2349 = vmatpush.bf16.msra.mxu0 %v4207_v27 }
 0x60c   : > { %v1789_v25 = vpop.xlane.xlu2 %1788 }
 0x60d   : > { %v1800_v50 = vmul.f32 %v5866_v32, %v1789_v25  ;;  %v5033_v25 = vld [vmem:[%s5483_s5 + $0x1a4] sm:$0xf] }
 0x60f   : > { %v5869_v34 = vsub.f32 %v1783_v14, %v1800_v50  ;;  %v4412_v50 = vld [vmem:[%s5483_s5 + $0x1e0] sm:$0xf0] }
 0x611   : > { %v1804_v30 = vmul.f32 %v5869_v34, %v5869_v34 }
 0x613   : > { %v1806_v35 = vsel %vm1080_vm2, %v1804_v30, 0.0 }
 0x614   : > { %v1792_v36 = vpop.xlane.xlu0 %1791  ;;  %1807 = vadd.xlane.f32.xlu1 %v1806_v35  ;;  %v4395_v35 = vor.u32 %v5039_v29, %v4394_v28 }
 0x615   : > { %v1801_v39 = vmul.f32 %v5866_v32, %v1792_v36  ;;  %v4415_v36 = vor.u32 %v5033_v25, %v4412_v50  ;;  %v5196_v50 = vld [vmem:[%s1014_s4] ss:$0 sm:$0xff] }
 0x617   : > { %v5875_v33 = vsub.f32 %v1784_v47, %v1801_v39  ;;  %v4195_v47 = vor.u32 %v4990_v17, %v4194_v13  ;;  %v4418_v39 = vld [vmem:[%s5483_s5 + $0x1a8] sm:$0xf]  ;;  %2402 = vmatpush.bf16.msrb.mxu0 %v4415_v36 }
 0x618   : > { %v4226_v13 = vld [vmem:[%s5483_s5 + $0x28] sm:$0xf] }
 0x619   : > { %v1805_v21 = vmul.f32 %v5875_v33, %v5875_v33  ;;  %2307 = vmatpush.bf16.msrb.mxu3 %v4195_v47  ;;  %v4223_v47 = vor.u32 %v4985_v42, %v4220_v9  ;;  %v4227_v20 = vor.u32 %v4994_v15, %v4226_v13  ;;  %v4303_v42 = vor.u32 %v5003_v63, %v4300_v51  ;;  %v4993_v13 = vld [vmem:[%s5483_s5 + $0x5c] sm:$0xf0]  ;;  %v4987_v15 = vld [vmem:[%s5483_s5 + $0x34] sm:$0xf]  ;;  %v4372_v63 = vld [vmem:[%s5483_s5 + $0x178] sm:$0xf0] }
 0x61a   : > { %v5052_v51 = vld [vmem:[%s5495_s28 + $0x38] sm:$0xff] }
 0x61b   : > { %v1809_v40 = vsel %vm1080_vm2, %v1805_v21, 0.0  ;;  %v5042_v21 = vld [vmem:[%s5483_s5 + $0x1e4] sm:$0xf0]  ;;  %2403 = vmatpush.bf16.msrb.mxu0 %v4351_v56  ;;  %v4346_v56 = vld [vmem:[%s5483_s5 + $0x120] sm:$0xf] }
 0x61c   : > { %1810 = vadd.xlane.f32.xlu2 %v1809_v40  ;;  %v5013_v40 = vld [vmem:[%s5483_s5 + $0x104] sm:$0xf]  ;;  %v4419_v41 = vor.u32 %v5042_v21, %v4418_v39  ;;  %v5030_v39 = vld [vmem:[%s5483_s5 + $0x18c] sm:$0xf]  ;;  %v4410_v21 = vld [vmem:[%s5483_s5 + $0x1a0] sm:$0xf]  ;;  %v4347_v11 = vor.u32 %v5025_v58, %v4346_v56 }
 0x61d   : > { %2332 = vmatpush.bf16.msra.mxu3 %v4395_v35  ;;  %v4319_v31 = vor.u32 %v5013_v40, %v4316_v43  ;;  %v5041_v40 = vld [vmem:[%s5483_s5 + $0x1dc] sm:$0xf0]  ;;  %v5018_v58 = vld [vmem:[%s5483_s5 + $0x12c] sm:$0xf] }
 0x61e   : > { %2416 = vmatpush.bf16.msrb.mxu1 %v4419_v41  ;;  %v4411_v46 = vor.u32 %v5041_v40, %v4410_v21  ;;  %v4298_v21 = vld [vmem:[%s5483_s5 + $0xb0] sm:$0xf] }
 0x61f   : > { %2291 = vmatpush.bf16.msra.mxu2 %v4319_v31  ;;  %2404 = vmatpush.bf16.msrb.mxu0 %v4287_v54  ;;  %v5009_v54 = vld [vmem:[%s5483_s5 + $0xdc] sm:$0xf0]  ;;  %v5011_v40 = vld [vmem:[%s5483_s5 + $0xec] sm:$0xf0] }
 0x621   : > { %2333 = vmatpush.bf16.msra.mxu3 %v4331_v45 }
 0x622   : > { %2417 = vmatpush.bf16.msrb.mxu1 %v4355_v49  ;;  %v4370_v49 = vld [vmem:[%s5483_s5 + $0x138] sm:$0xf] }
 0x623   : > { %2292 = vmatpush.bf16.msra.mxu2 %v4255_v8  ;;  %2405 = vmatpush.bf16.msrb.mxu0 %v4223_v47  ;;  %v4998_v8 = vld [vmem:[%s5483_s5 + $0x8c] sm:$0xf]  ;;  %v4996_v47 = vld [vmem:[%s5483_s5 + $0x74] sm:$0xf0] }
 0x625   : > { %2334 = vmatpush.bf16.msra.mxu3 %v4267_v57  ;;  %v4282_v57 = vld [vmem:[%s5483_s5 + $0xa0] sm:$0xf] }
 0x626   : > { %2418 = vmatpush.bf16.msrb.mxu1 %v4291_v16  ;;  %v5012_v16 = vld [vmem:[%s5483_s5 + $0xf4] sm:$0xf0]  ;;  %v4283_v3 = vor.u32 %v5009_v54, %v4282_v57  ;;  %v5020_v54 = vld [vmem:[%s5483_s5 + $0x13c] sm:$0xf] }
 0x629   : > { %2335 = vmatpush.bf16.msra.mxu3 %v4203_v18  ;;  %v4242_v18 = vld [vmem:[%s5483_s5 + $0x38] sm:$0xf] }
 0x62a   : > { %2419 = vmatpush.bf16.msrb.mxu1 %v4227_v20 }
 0x687   : > { %v1808_v48 = vpop.xlane.xlu1 %1807 }
 0x688   : > { %v1812_v7 = vmul.f32 %v1808_v48, %v5866_v32  ;;  %v4981_v48 = vld [vmem:[%s5483_s5 + $0x4] sm:$0xf] }
 0x689   : > { %v4191_v10 = vor.u32 %v4981_v48, %v4188_v1  ;;  %v4306_v48 = vld [vmem:[%s5483_s5 + $0xb8] sm:$0xf]  ;;  %v4263_v1 = vor.u32 %v4998_v8, %v4260_v5  ;;  %v4228_v8 = vld [vmem:[%s5483_s5 + $0x68] sm:$0xf0] }
 0x68a   : > { %v5906_v14 = vadd.f32 1e-05, %v1812_v7  ;;  %v4307_v9 = vor.u32 %v5012_v16, %v4306_v48  ;;  %v5068_v48 = vld [vmem:[%s5495_s28 + $0xb8] sm:$0xff]  ;;  %v4375_v16 = vor.u32 %v5020_v54, %v4372_v63 }
 0x68b   : > { %2293 = vmatpush.bf16.msra.mxu2 %v4191_v10  ;;  %v4218_v10 = vld [vmem:[%s5483_s5 + $0x20] sm:$0xf]  ;;  %v5088_v54 = vld [vmem:[%s5495_s28 + $0x158] sm:$0xff] }
 0x68c   : > { %5242 = vrsqrt.f32 %v5906_v14  ;;  %vm1822_vm5 = vweird.f32 %v5906_v14  ;;  %v4219_v20 = vor.u32 %v4993_v13, %v4218_v10  ;;  %v4988_v10 = vld [vmem:[%s5483_s5 + $0x3c] sm:$0xf]  ;;  %v5059_v13 = vld [vmem:[%s5495_s28 + $0x70] sm:$0xff] }
 0x68d   : > { %v5108_v63 = vld [vmem:[%s5495_s28 + $0x1f8] sm:$0xff] }
 0x68f   : > { %v1811_v30 = vpop.xlane.xlu2 %1810 }
 0x690   : > { %v1813_v38 = vmul.f32 %v1811_v30, %v5866_v32 }
 0x692   : > { %v5243_v37 = vpop.eup %5242  ;;  %v1815_v55 = vadd.f32 1e-05, %v1813_v38  ;;  %v5035_v38 = vld [vmem:[%s5483_s5 + $0x1b4] sm:$0xf] }
 0x693   : > { %v1817_v61 = vmul.f32 %v5243_v37, %v5906_v14  ;;  %vm1823_vm4 = vweird.f32 %v5243_v37  ;;  %v5195_v14 = vld [vmem:[%s1011_s1] ss:$0 sm:$0xff]  ;;  %s6367_s1 = scalar_lea.vmem %s6296_s14, %s5440_s7 }
 0x694   : > { %5244 = vrsqrt.f32 %v1815_v55  ;;  %vm1824_vm6 = vmor %vm1822_vm5, %vm1823_vm4  ;;  %vm1832_vm8 = vweird.f32 %v1815_v55 }
 0x695   : > { %v1818_v60 = vmul.f32 %v5243_v37, %v1817_v61  ;;  %v4364_v61 = vld [vmem:[%s5483_s5 + $0x170] sm:$0xf0] }
 0x696   : > { %v4367_v2 = vor.u32 %v5019_v59, %v4364_v61  ;;  %v4356_v59 = vld [vmem:[%s5483_s5 + $0x168] sm:$0xf0] }
 0x697   : > { %v1819_v7 = vmul.f32 0.5, %v1818_v60  ;;  %v4371_v60 = vor.u32 %v5028_v62, %v4370_v49  ;;  %v4359_v61 = vor.u32 %v5018_v58, %v4356_v59  ;;  %v5002_v49 = vld [vmem:[%s5483_s5 + $0xac] sm:$0xf]  ;;  %v5079_v58 = vld [vmem:[%s5495_s28 + $0x110] sm:$0xff] }
 0x698   : > { %v4292_v62 = vld [vmem:[%s5483_s5 + $0xe8] sm:$0xf0]  ;;  %v5091_v59 = vld [vmem:[%s5495_s28 + $0x170] sm:$0xff] }
 0x699   : > { %v1820_v17 = vsub.f32 1.5, %v1819_v7  ;;  %v4196_v7 = vld [vmem:[%s5483_s5 + $0x48] sm:$0xf0] }
 0x69a   : > { %v5245_v19 = vpop.eup %5244 }
 0x69b   : > { %v1821_v23 = vmul.f32 %v5243_v37, %v1820_v17  ;;  %v1827_v27 = vmul.f32 %v5245_v19, %v1815_v55  ;;  %vm1833_vm7 = vweird.f32 %v5245_v19  ;;  %v4236_v17 = vld [vmem:[%s5483_s5 + $0x70] sm:$0xf0] }
 0x69c   : > { %vm1834_vm9 = vmor %vm1832_vm8, %vm1833_vm7 }
 0x69d   : > { %v1828_v24 = vmul.f32 %v5245_v19, %v1827_v27  ;;  %v1825_v26 = vsel %vm1824_vm6, %v5243_v37, %v1821_v23  ;;  %v4431_v37 = vor.u32 %v5035_v38, %v4428_v44  ;;  %v5032_v23 = vld [vmem:[%s5483_s5 + $0x19c] sm:$0xf]  ;;  %v4239_v27 = vor.u32 %v4987_v15, %v4236_v17  ;;  %v5050_v17 = vld [vmem:[%s5495_s28 + $0x28] sm:$0xff] }
 0x69e   : > { %v1836_v22 = vmul.f32 %v1825_v26, %v5869_v34  ;;  %v4388_v34 = vld [vmem:[%s5483_s5 + $0x1c8] sm:$0xf0]  ;;  %v4404_v26 = vld [vmem:[%s5483_s5 + $0x1d8] sm:$0xf0]  ;;  %v4299_v44 = vor.u32 %v5011_v40, %v4298_v21  ;;  %v5083_v21 = vld [vmem:[%s5495_s28 + $0x130] sm:$0xff] }
 0x69f   : > { %v1829_v12 = vmul.f32 0.5, %v1828_v24  ;;  %v4391_v45 = vor.u32 %v5030_v39, %v4388_v34  ;;  %v4243_v24 = vor.u32 %v4996_v47, %v4242_v18  ;;  %v5000_v39 = vld [vmem:[%s5483_s5 + $0x9c] sm:$0xf]  ;;  %v5066_v18 = vld [vmem:[%s5495_s28 + $0xa8] sm:$0xff]  ;;  %v5099_v40 = vld [vmem:[%s5495_s28 + $0x1b0] sm:$0xff] }
 0x6a0   : > { %v1841_v30 = vmul.f32 %v5195_v14, %v1836_v22  ;;  %v4276_v34 = vld [vmem:[%s5483_s5 + $0xd8] sm:$0xf0] }
 0x6a1   : > { %v1830_v28 = vsub.f32 1.5, %v1829_v12  ;;  %v4426_v12 = vld [vmem:[%s5483_s5 + $0x1b0] sm:$0xf]  ;;  %v4279_v38 = vor.u32 %v5000_v39, %v4276_v34  ;;  %v4244_v15 = vld [vmem:[%s5483_s5 + $0x78] sm:$0xf0] }
 0x6a2   : > { %v5966_v41 = vadd.f32 %v5196_v50, %v1841_v30  ;;  %v5027_v30 = vld [vmem:[%s5483_s5 + $0x16c] sm:$0xf0]  ;;  %v4247_v47 = vor.u32 %v4988_v10, %v4244_v15  ;;  %v5084_v39 = vld [vmem:[%s5495_s28 + $0x138] sm:$0xff] }
 0x6a3   : > { %v1831_v29 = vmul.f32 %v5245_v19, %v1830_v28  ;;  %v5043_v28 = vld [vmem:[%s5483_s5 + $0x1ec] sm:$0xf0]  ;;  %v5100_v34 = vld [vmem:[%s5495_s28 + $0x1b8] sm:$0xff] }
 0x6a4   : > { %v4427_v22 = vor.u32 %v5043_v28, %v4426_v12  ;;  %v5064_v12 = vld [vmem:[%s5495_s28 + $0x98] sm:$0xff] }
 0x6a5   : > { %v1835_v25 = vsel %vm1834_vm9, %v5245_v19, %v1831_v29  ;;  %v4199_v19 = vor.u32 %v4982_v4, %v4196_v7  ;;  %v5016_v29 = vld [vmem:[%s5483_s5 + $0x11c] sm:$0xf]  ;;  %v5051_v4 = vld [vmem:[%s5495_s28 + $0x30] sm:$0xff] }
 0x6a6   : > { %v1837_v35 = vmul.f32 %v1835_v25, %v5875_v33  ;;  %v5044_v33 = vld [vmem:[%s5483_s5 + $0x1f4] sm:$0xf0]  ;;  %v4340_v25 = vld [vmem:[%s5483_s5 + $0x158] sm:$0xf0]  ;;  %v5067_v7 = vld [vmem:[%s5495_s28 + $0xb0] sm:$0xff] }
 0x6a7   : > { %v4435_v55 = vor.u32 %v5044_v33, %v4434_v6  ;;  %v4984_v6 = vld [vmem:[%s5483_s5 + $0x1c] sm:$0xf] }
 0x6a8   : > { %v1842_v36 = vmul.f32 %v5195_v14, %v1837_v35  ;;  %v4407_v14 = vor.u32 %v5032_v23, %v4404_v26  ;;  %v4343_v35 = vor.u32 %v5016_v29, %v4340_v25  ;;  %v4212_v33 = vld [vmem:[%s5483_s5 + $0x58] sm:$0xf0]  ;;  %v5065_v23 = vld [vmem:[%s5495_s28 + $0xa0] sm:$0xff]  ;;  %v5063_v29 = vld [vmem:[%s5495_s28 + $0x90] sm:$0xff] }
 0x6a9   : > { %v4215_v52 = vor.u32 %v4984_v6, %v4212_v33  ;;  %v5048_v26 = vld [vmem:[%s5495_s28 + $0x18] sm:$0xff]  ;;  %v5055_v25 = vld [vmem:[%s5495_s28 + $0x50] sm:$0xff]  ;;  %v5054_v6 = vld [vmem:[%s5495_s28 + $0x48] sm:$0xff] }
 0x6aa   : > { %v5968_v43 = vadd.f32 %v5196_v50, %v1842_v36  ;;  %v4362_v50 = vld [vmem:[%s5483_s5 + $0x130] sm:$0xf]  ;;  %v5056_v28 = vld [vmem:[%s5495_s28 + $0x58] sm:$0xff]  ;;  %v5074_v33 = vld [vmem:[%s5495_s28 + $0xe8] sm:$0xff] }
 0x6ab   : > { %v4363_v36 = vor.u32 %v5027_v30, %v4362_v50  ;;  %v5046_v50 = vld [vmem:[%s5495_s28 + $0x8] sm:$0xff]  ;;  %v5104_v10 = vld [vmem:[%s5495_s28 + $0x1d8] sm:$0xff] }
 0x6ac   : > { %v5975_v31 = vpack.c.bf16 %v5968_v43, %v5966_v41  ;;  %v5062_v30 = vld [vmem:[%s5495_s28 + $0x88] sm:$0xff] }
 0x6ae   : > { %4440 = vmatmul.msk.bf16.vlgmr.msrb.gmra.mxu2 %vm1080_vm2, %v5975_v31  ;;  %4442 = vmatmul.msk.bf16.vlgmr.msrb.gmra.mxu3 %vm1080_vm2, %v5975_v31 }
 0x6af   : > { %4445 = vmatmul.msk.bf16.vlgmr.msra.gmra.mxu0 %vm1080_vm2, %v5975_v31  ;;  %4446 = vmatmul.msk.bf16.vlgmr.msra.gmra.mxu1 %vm1080_vm2, %v5975_v31 }
 0x6b0   : > { %2318 = vmatpush.bf16.msrb.mxu2 %v4391_v45  ;;  %2388 = vmatpush.bf16.msrb.mxu3 %v4411_v46  ;;  %v4234_v45 = vld [vmem:[%s5483_s5 + $0x30] sm:$0xf] }
 0x6b1   : > { %2458 = vmatpush.bf16.msra.mxu0 %v4431_v37  ;;  %2472 = vmatpush.bf16.msra.mxu1 %v4435_v55  ;;  %v4995_v46 = vld [vmem:[%s5483_s5 + $0x6c] sm:$0xf0]  ;;  %v5034_v37 = vld [vmem:[%s5483_s5 + $0x1ac] sm:$0xf] }
 0x6b2   : > { %v4235_v53 = vor.u32 %v4995_v46, %v4234_v45  ;;  %v4420_v55 = vld [vmem:[%s5483_s5 + $0x1e8] sm:$0xf0]  ;;  %v5081_v45 = vld [vmem:[%s5495_s28 + $0x120] sm:$0xff] }
 0x6b3   : > { %v4423_v56 = vor.u32 %v5034_v37, %v4420_v55  ;;  %v5097_v46 = vld [vmem:[%s5495_s28 + $0x1a0] sm:$0xff]  ;;  %v5092_v37 = vld [vmem:[%s5495_s28 + $0x178] sm:$0xff] }
 0x6b4   : > { %2319 = vmatpush.bf16.msrb.mxu2 %v4327_v0  ;;  %2389 = vmatpush.bf16.msrb.mxu3 %v4347_v11  ;;  %v4295_v0 = vor.u32 %v5002_v49, %v4292_v62  ;;  %v4986_v11 = vld [vmem:[%s5483_s5 + $0x2c] sm:$0xf]  ;;  %v5096_v55 = vld [vmem:[%s5495_s28 + $0x198] sm:$0xff]  ;;  %v5071_v49 = vld [vmem:[%s5495_s28 + $0xd0] sm:$0xff] }
 0x6b5   : > { %2459 = vmatpush.bf16.msra.mxu0 %v4367_v2  ;;  %2473 = vmatpush.bf16.msra.mxu1 %v4371_v60  ;;  %v4231_v5 = vor.u32 %v4986_v11, %v4228_v8  ;;  %v5036_v2 = vld [vmem:[%s5483_s5 + $0x1bc] sm:$0xf]  ;;  %v5078_v62 = vld [vmem:[%s5495_s28 + $0x108] sm:$0xff] }
 0x6b6   : > { %v4436_v60 = vld [vmem:[%s5483_s5 + $0x1f8] sm:$0xf0]  ;;  %v5094_v11 = vld [vmem:[%s5495_s28 + $0x188] sm:$0xff] }
 0x6b7   : > { %v4439_v57 = vor.u32 %v5036_v2, %v4436_v60  ;;  %v5070_v8 = vld [vmem:[%s5495_s28 + $0xc8] sm:$0xff]  ;;  %v5089_v2 = vld [vmem:[%s5495_s28 + $0x160] sm:$0xff] }
 0x6b8   : > { %2320 = vmatpush.bf16.msrb.mxu2 %v4263_v1  ;;  %2390 = vmatpush.bf16.msrb.mxu3 %v4283_v3  ;;  %v5004_v1 = vld [vmem:[%s5483_s5 + $0xbc] sm:$0xf]  ;;  %v5093_v60 = vld [vmem:[%s5495_s28 + $0x180] sm:$0xff] }
 0x6b9   : > { %2460 = vmatpush.bf16.msra.mxu0 %v4303_v42  ;;  %2474 = vmatpush.bf16.msra.mxu1 %v4307_v9  ;;  %v4308_v3 = vld [vmem:[%s5483_s5 + $0xf8] sm:$0xf0] }
 0x6ba   : > { %v5060_v42 = vld [vmem:[%s5495_s28 + $0x78] sm:$0xff]  ;;  %v4311_v9 = vor.u32 %v5004_v1, %v4308_v3  ;;  %v5106_v1 = vld [vmem:[%s5495_s28 + $0x1e8] sm:$0xff]  ;;  %v5085_v3 = vld [vmem:[%s5495_s28 + $0x140] sm:$0xff] }
 0x6bc   : > { %2321 = vmatpush.bf16.msrb.mxu2 %v4199_v19  ;;  %2391 = vmatpush.bf16.msrb.mxu3 %v4219_v20  ;;  %v5058_v19 = vld [vmem:[%s5495_s28 + $0x68] sm:$0xff]  ;;  %v5049_v20 = vld [vmem:[%s5495_s28 + $0x20] sm:$0xff] }
 0x6bd   : > { %2461 = vmatpush.bf16.msra.mxu0 %v4239_v27  ;;  %2475 = vmatpush.bf16.msra.mxu1 %v4243_v24  ;;  %v5057_v27 = vld [vmem:[%s5495_s28 + $0x60] sm:$0xff]  ;;  %v5076_v24 = vld [vmem:[%s5495_s28 + $0xf8] sm:$0xff] }
 0x6be   : > { %4441 = vmatmul.msk.bf16.vlgmr.msra.gmra.mxu2 %vm1080_vm2, %v5975_v31  ;;  %4444 = vmatmul.msk.bf16.vlgmr.msra.gmra.mxu3 %vm1080_vm2, %v5975_v31 }
 0x6bf   : > { %4449 = vmatmul.msk.bf16.vlgmr.msrb.gmra.mxu0 %vm1080_vm2, %v5975_v31  ;;  %4450 = vmatmul.msk.bf16.vlgmr.msrb.gmra.mxu1 %vm1080_vm2, %v5975_v31 }
 0x6c0   : > { %2374 = vmatpush.bf16.msra.mxu2 %v4407_v14  ;;  %2444 = vmatpush.bf16.msra.mxu3 %v4427_v22  ;;  %v5075_v14 = vld [vmem:[%s5495_s28 + $0xf0] sm:$0xff] }
 0x6c1   : > { %3600 = vmatpush.bf16.msrb.mxu1 %v5068_v48  ;;  %3586 = vmatpush.bf16.msrb.mxu0 %v5060_v42  ;;  %v5047_v22 = vld [vmem:[%s5495_s28 + $0x10] sm:$0xff] }
 0x6c2   : > { %v5107_v48 = vld [vmem:[%s5495_s28 + $0x1f0] sm:$0xff] }
 0x6c4   : > { %2375 = vmatpush.bf16.msra.mxu2 %v4343_v35  ;;  %2445 = vmatpush.bf16.msra.mxu3 %v4363_v36  ;;  %v5045_v35 = vld [vmem:[%s5495_s28] sm:$0xff] }
 0x6c5   : > { %3601 = vmatpush.bf16.msrb.mxu1 %v5067_v7  ;;  %3587 = vmatpush.bf16.msrb.mxu0 %v5059_v13  ;;  %v5061_v36 = vld [vmem:[%s5495_s28 + $0x80] sm:$0xff] }
 0x6c8   : > { %2376 = vmatpush.bf16.msra.mxu2 %v4279_v38  ;;  %2446 = vmatpush.bf16.msra.mxu3 %v4299_v44  ;;  %v5082_v38 = vld [vmem:[%s5495_s28 + $0x128] sm:$0xff] }
 0x6c9   : > { %3602 = vmatpush.bf16.msrb.mxu1 %v5066_v18  ;;  %3588 = vmatpush.bf16.msrb.mxu0 %v5058_v19  ;;  %v5098_v44 = vld [vmem:[%s5495_s28 + $0x1a8] sm:$0xff]  ;;  %v5103_v18 = vld [vmem:[%s5495_s28 + $0x1d0] sm:$0xff] }
 0x6cc   : > { %2377 = vmatpush.bf16.msra.mxu2 %v4215_v52  ;;  %2447 = vmatpush.bf16.msra.mxu3 %v4235_v53  ;;  %v5073_v52 = vld [vmem:[%s5495_s28 + $0xe0] sm:$0xff]  ;;  %v5080_v53 = vld [vmem:[%s5495_s28 + $0x118] sm:$0xff] }
 0x6cd   : > { %3603 = vmatpush.bf16.msrb.mxu1 %v5065_v23  ;;  %3589 = vmatpush.bf16.msrb.mxu0 %v5057_v27 }
 0x6ce   : > { %4443 = vmatmul.msk.bf16.vlgmr.msrb.gmra.mxu2 %vm1080_vm2, %v5975_v31  ;;  %4448 = vmatmul.msk.bf16.vlgmr.msrb.gmra.mxu3 %vm1080_vm2, %v5975_v31 }
 0x6cf   : > { %4453 = vmatmul.msk.bf16.vlgmr.msra.gmra.mxu0 %vm1080_vm2, %v5975_v31  ;;  %4454 = vmatmul.msk.bf16.vlgmr.msra.gmra.mxu1 %vm1080_vm2, %v5975_v31 }
 0x6d0   : > { %2430 = vmatpush.bf16.msrb.mxu2 %v4423_v56  ;;  %3572 = vmatpush.bf16.msrb.mxu3 %v5052_v51  ;;  %v5072_v56 = vld [vmem:[%s5495_s28 + $0xd8] sm:$0xff]  ;;  %v5087_v51 = vld [vmem:[%s5495_s28 + $0x150] sm:$0xff] }
 0x6d1   : > { %3604 = vmatpush.bf16.msrb.mxu1 %v5064_v12  ;;  %3590 = vmatpush.bf16.msrb.mxu0 %v5056_v28 }
 0x6d4   : > { %2431 = vmatpush.bf16.msrb.mxu2 %v4359_v61  ;;  %3573 = vmatpush.bf16.msrb.mxu3 %v5051_v4  ;;  %v5095_v61 = vld [vmem:[%s5495_s28 + $0x190] sm:$0xff]  ;;  %v5105_v4 = vld [vmem:[%s5495_s28 + $0x1e0] sm:$0xff] }
 0x6d5   : > { %3605 = vmatpush.bf16.msrb.mxu1 %v5063_v29  ;;  %3591 = vmatpush.bf16.msrb.mxu0 %v5055_v25  ;;  %v5116_v29 = vld [vmem:[%s5495_s28 + $0x238] sm:$0xff] }
 0x6d6   : > { %v5132_v25 = vld [vmem:[%s5495_s28 + $0x2b8] sm:$0xff] }
 0x6d8   : > { %2432 = vmatpush.bf16.msrb.mxu2 %v4295_v0  ;;  %3574 = vmatpush.bf16.msrb.mxu3 %v5050_v17  ;;  %v5090_v0 = vld [vmem:[%s5495_s28 + $0x168] sm:$0xff] }
 0x6d9   : > { %3606 = vmatpush.bf16.msrb.mxu1 %v5062_v30  ;;  %3592 = vmatpush.bf16.msrb.mxu0 %v5054_v6 }
 0x6dc   : > { %2433 = vmatpush.bf16.msrb.mxu2 %v4231_v5  ;;  %3575 = vmatpush.bf16.msrb.mxu3 %v5049_v20  ;;  %v5077_v5 = vld [vmem:[%s5495_s28 + $0x100] sm:$0xff] }
 0x6dd   : > { %3607 = vmatpush.bf16.msrb.mxu1 %v5061_v36 }
 0x6de   : > { %4447 = vmatmul.msk.bf16.vlgmr.msra.gmra.mxu2 %vm1080_vm2, %v5975_v31  ;;  %4452 = vmatmul.msk.bf16.vlgmr.msra.gmra.mxu3 %vm1080_vm2, %v5975_v31 }
 0x6e0   : > { %2486 = vmatpush.bf16.msra.mxu2 %v4439_v57  ;;  %3576 = vmatpush.bf16.msrb.mxu3 %v5048_v26  ;;  %v5069_v57 = vld [vmem:[%s5495_s28 + $0xc0] sm:$0xff]  ;;  %v5102_v26 = vld [vmem:[%s5495_s28 + $0x1c8] sm:$0xff] }
 0x6e1   : > { %3656 = vmatpush.bf16.msra.mxu1 %v5100_v34 }
 0x6e4   : > { %2487 = vmatpush.bf16.msra.mxu2 %v4375_v16  ;;  %3577 = vmatpush.bf16.msrb.mxu3 %v5047_v22  ;;  %v5086_v16 = vld [vmem:[%s5495_s28 + $0x148] sm:$0xff] }
 0x6e5   : > { %3657 = vmatpush.bf16.msra.mxu1 %v5099_v40  ;;  %v5131_v40 = vld [vmem:[%s5495_s28 + $0x2b0] sm:$0xff] }
 0x6e8   : > { %2488 = vmatpush.bf16.msra.mxu2 %v4311_v9  ;;  %3578 = vmatpush.bf16.msrb.mxu3 %v5046_v50  ;;  %v6126_v9 = vld [vmem:[%s5489_s9] sm:$0xff] }
 0x6e9   : > { %3658 = vmatpush.bf16.msra.mxu1 %v5098_v44  ;;  %v1917_v13 = vperm.slane %v6126_v9, 0  ;;  %v1919_v15 = vperm.slane %v6126_v9, 2  ;;  %v1921_v44 = vperm.slane %v6126_v9, 4  ;;  %v1923_v6 = vperm.slane %v6126_v9, 6 }
 0x6ec   : > { %2489 = vmatpush.bf16.msra.mxu2 %v4247_v47  ;;  %3579 = vmatpush.bf16.msrb.mxu3 %v5045_v35  ;;  %v5101_v35 = vld [vmem:[%s5495_s28 + $0x1c0] sm:$0xff] }
 0x6ed   : > { %3659 = vmatpush.bf16.msra.mxu1 %v5097_v46 }
 0x6ee   : > { %4451 = vmatmul.msk.bf16.vlgmr.msrb.gmra.mxu2 %vm1080_vm2, %v5975_v31 }
 0x6f0   : > { %3614 = vmatpush.bf16.msrb.mxu2 %v5076_v24  ;;  %3628 = vmatpush.bf16.msra.mxu3 %v5084_v39 }
 0x6f1   : > { %3660 = vmatpush.bf16.msra.mxu1 %v5096_v55 }
 0x6f4   : > { %3615 = vmatpush.bf16.msrb.mxu2 %v5075_v14  ;;  %3629 = vmatpush.bf16.msra.mxu3 %v5083_v21  ;;  %v5115_v21 = vld [vmem:[%s5495_s28 + $0x230] sm:$0xff] }
 0x6f5   : > { %3661 = vmatpush.bf16.msra.mxu1 %v5095_v61 }
 0x6f8   : > { %3630 = vmatpush.bf16.msra.mxu3 %v5082_v38  ;;  %3616 = vmatpush.bf16.msrb.mxu2 %v5074_v33  ;;  %v1918_v38 = vperm.slane %v6126_v9, 1  ;;  %v5114_v33 = vld [vmem:[%s5495_s28 + $0x228] sm:$0xff] }
 0x6f9   : > { %3662 = vmatpush.bf16.msra.mxu1 %v5094_v11 }
 0x6fc   : > { %3631 = vmatpush.bf16.msra.mxu3 %v5081_v45  ;;  %3617 = vmatpush.bf16.msrb.mxu2 %v5073_v52  ;;  %v5130_v45 = vld [vmem:[%s5495_s28 + $0x2a8] sm:$0xff] }
 0x6fd   : > { %3663 = vmatpush.bf16.msra.mxu1 %v5093_v60 }
 0x6fe   : > { %4455 = vmatmul.msk.bf16.vlgmr.msra.gmra.mxu2 %vm1080_vm2, %v5975_v31  ;;  %v5053_v31 = vld [vmem:[%s5495_s28 + $0x40] sm:$0xff] }
 0x6ff   : > { %3593 = vmatpush.bf16.msrb.mxu0 %v5053_v31 }
 0x700   : > { %3632 = vmatpush.bf16.msra.mxu3 %v5080_v53  ;;  %3618 = vmatpush.bf16.msrb.mxu2 %v5072_v56 }
 0x703   : > { %3642 = vmatpush.bf16.msra.mxu0 %v5092_v37 }
 0x704   : > { %3633 = vmatpush.bf16.msra.mxu3 %v5079_v58  ;;  %3619 = vmatpush.bf16.msrb.mxu2 %v5071_v49  ;;  %v5113_v58 = vld [vmem:[%s5495_s28 + $0x220] sm:$0xff] }
 0x707   : > { %3643 = vmatpush.bf16.msra.mxu0 %v5091_v59  ;;  %v5129_v59 = vld [vmem:[%s5495_s28 + $0x2a0] sm:$0xff] }
 0x708   : > { %3634 = vmatpush.bf16.msra.mxu3 %v5078_v62  ;;  %3620 = vmatpush.bf16.msrb.mxu2 %v5070_v8 }
 0x70b   : > { %3644 = vmatpush.bf16.msra.mxu0 %v5090_v0 }
 0x70c   : > { %3635 = vmatpush.bf16.msra.mxu3 %v5077_v5  ;;  %3621 = vmatpush.bf16.msrb.mxu2 %v5069_v57  ;;  %v5112_v57 = vld [vmem:[%s5495_s28 + $0x218] sm:$0xff] }
 0x70f   : > { %3645 = vmatpush.bf16.msra.mxu0 %v5089_v2 }
 0x710   : > { %3670 = vmatpush.bf16.msra.mxu2 %v5108_v63 }
 0x713   : > { %3646 = vmatpush.bf16.msra.mxu0 %v5088_v54 }
 0x714   : > { %3671 = vmatpush.bf16.msra.mxu2 %v5107_v48  ;;  %v5128_v48 = vld [vmem:[%s5495_s28 + $0x298] sm:$0xff] }
 0x717   : > { %3647 = vmatpush.bf16.msra.mxu0 %v5087_v51  ;;  %v5124_v51 = vld [vmem:[%s5495_s28 + $0x278] sm:$0xff] }
 0x718   : > { %3672 = vmatpush.bf16.msra.mxu2 %v5106_v1 }
 0x71b   : > { %3648 = vmatpush.bf16.msra.mxu0 %v5086_v16 }
 0x71c   : > { %3673 = vmatpush.bf16.msra.mxu2 %v5105_v4 }
 0x71f   : > { %3649 = vmatpush.bf16.msra.mxu0 %v5085_v3 }
 0x720   : > { %3674 = vmatpush.bf16.msra.mxu2 %v5104_v10  ;;  %v5123_v10 = vld [vmem:[%s5495_s28 + $0x270] sm:$0xff] }
 0x724   : > { %3675 = vmatpush.bf16.msra.mxu2 %v5103_v18  ;;  %v1920_v18 = vperm.slane %v6126_v9, 3 }
 0x728   : > { %3676 = vmatpush.bf16.msra.mxu2 %v5102_v26 }
 0x72c   : > { %v2365_v17 = vpop.f32.mrf.mxu1  ;;  %3677 = vmatpush.bf16.msra.mxu2 %v5101_v35  ;;  %v2351_v46 = vpop.f32.mrf.mxu0 }
 0x72d   : > { %v2366_v37 = vadd.f32 %v2365_v17, %v1923_v6 }
 0x72f   : > { %v2502_v60 = vmax.f32 %v2366_v37, 0.0 }
 0x731   : > { %v2281_v7 = vpop.f32.mrf.mxu2  ;;  %v2309_v42 = vpop.f32.mrf.mxu3 }
 0x732   : > { %v2282_v47 = vadd.f32 %v2281_v7, %v1917_v13  ;;  %v2310_v19 = vadd.f32 %v2309_v42, %v1919_v15  ;;  %v5111_v7 = vld [vmem:[%s5495_s28 + $0x210] sm:$0xff]  ;;  %v6150_v42 = vld [vmem:[%s5489_s9 + $0x8] sm:$0xff] }
 0x734   : > { %v2496_v12 = vmax.f32 %v2282_v47, 0.0  ;;  %v2498_v28 = vmax.f32 %v2310_v19, 0.0  ;;  %v2367_v36 = vpop.f32.mrf.mxu1  ;;  %v2353_v1 = vpop.f32.mrf.mxu0  ;;  %v1925_v47 = vperm.slane %v6150_v42, 0  ;;  %v1927_v19 = vperm.slane %v6150_v42, 2 }
 0x735   : > { %v2368_v31 = vadd.f32 %v2367_v36, %v1923_v6  ;;  %v5164_v6 = vld [vmem:[%s5495_s28 + $0x3b8] sm:$0xff] }
 0x737   : > { %v2518_v0 = vmax.f32 %v2368_v31, 0.0 }
 0x739   : > { %v2283_v20 = vpop.f32.mrf.mxu2  ;;  %v2311_v23 = vpop.f32.mrf.mxu3  ;;  %v2534_v16 = vpack.c.bf16 %v2518_v0, %v2502_v60  ;;  %v5119_v0 = vld [vmem:[%s5495_s28 + $0x250] sm:$0xff]  ;;  %v1924_v60 = vperm.slane %v6126_v9, 7 }
 0x73a   : > { %v2284_v27 = vadd.f32 %v2283_v20, %v1917_v13  ;;  %v2312_v24 = vadd.f32 %v2311_v23, %v1919_v15  ;;  %v5127_v13 = vld [vmem:[%s5495_s28 + $0x290] sm:$0xff]  ;;  %v1922_v15 = vperm.slane %v6126_v9, 5  ;;  %v5110_v20 = vld [vmem:[%s5495_s28 + $0x208] sm:$0xff] }
 0x73c   : > { %v2512_v14 = vmax.f32 %v2284_v27, 0.0  ;;  %v2514_v22 = vmax.f32 %v2312_v24, 0.0  ;;  %v2421_v61 = vpop.f32.mrf.mxu1  ;;  %v2354_v23 = vadd.f32 %v2353_v1, %v1922_v15  ;;  %v5122_v27 = vld [vmem:[%s5495_s28 + $0x268] sm:$0xff]  ;;  %v2352_v26 = vadd.f32 %v2351_v46, %v1922_v15  ;;  %v2407_v35 = vpop.f32.mrf.mxu0  ;;  %v5161_v1 = vld [vmem:[%s5495_s28 + $0x3a0] sm:$0xff] }
 0x73d   : > { %v5126_v24 = vld [vmem:[%s5495_s28 + $0x288] sm:$0xff]  ;;  %v5137_v15 = vld [vmem:[%s5495_s28 + $0x2e0] sm:$0xff] }
 0x73e   : > { %v2528_v50 = vpack.c.bf16 %v2512_v14, %v2496_v12  ;;  %v2530_v30 = vpack.c.bf16 %v2514_v22, %v2498_v28  ;;  %v2422_v22 = vadd.f32 %v2421_v61, %v1927_v19  ;;  %v5147_v61 = vld [vmem:[%s5495_s28 + $0x330] sm:$0xff] }
 0x740   : > { %3580 = vmatmul.bf16.vlgmr.msrb.gmra.mxu3 %v2528_v50  ;;  %3608 = vmatmul.bf16.vlgmr.msrb.gmra.mxu1 %v2530_v30  ;;  %v5109_v50 = vld [vmem:[%s5495_s28 + $0x200] sm:$0xff]  ;;  %v2517_v30 = vmax.f32 %v2354_v23, 0.0  ;;  %v5160_v23 = vld [vmem:[%s5495_s28 + $0x398] sm:$0xff] }
 0x741   : > { %3684 = vmatpush.bf16.msrb.mxu3 %v5116_v29  ;;  %3712 = vmatpush.bf16.msrb.mxu1 %v5132_v25  ;;  %v2295_v39 = vpop.f32.mrf.mxu2  ;;  %v2337_v34 = vpop.f32.mrf.mxu3 }
 0x742   : > { %v2296_v52 = vadd.f32 %v2295_v39, %v1918_v38  ;;  %v2338_v53 = vadd.f32 %v2337_v34, %v1921_v44  ;;  %v5121_v34 = vld [vmem:[%s5495_s28 + $0x260] sm:$0xff] }
 0x744   : > { %v2497_v11 = vmax.f32 %v2296_v52, 0.0  ;;  %v2500_v8 = vmax.f32 %v2338_v53, 0.0  ;;  %v2423_v17 = vpop.f32.mrf.mxu1  ;;  %v2506_v52 = vmax.f32 %v2422_v22, 0.0  ;;  %v5159_v22 = vld [vmem:[%s5495_s28 + $0x390] sm:$0xff] }
 0x745   : > { %3685 = vmatpush.bf16.msrb.mxu3 %v5115_v21  ;;  %3713 = vmatpush.bf16.msrb.mxu1 %v5131_v40  ;;  %v2424_v12 = vadd.f32 %v2423_v17, %v1927_v19  ;;  %v5125_v21 = vld [vmem:[%s5495_s28 + $0x280] sm:$0xff]  ;;  %v2501_v40 = vmax.f32 %v2352_v26, 0.0  ;;  %v5136_v26 = vld [vmem:[%s5495_s28 + $0x2d8] sm:$0xff] }
 0x747   : > { %v2533_v53 = vpack.c.bf16 %v2517_v30, %v2501_v40  ;;  %v1929_v30 = vperm.slane %v6150_v42, 4  ;;  %v1928_v40 = vperm.slane %v6150_v42, 3 }
 0x749   : > { %3686 = vmatpush.bf16.msrb.mxu3 %v5114_v33  ;;  %3714 = vmatpush.bf16.msrb.mxu1 %v5130_v45  ;;  %v2297_v55 = vpop.f32.mrf.mxu2  ;;  %v2339_v56 = vpop.f32.mrf.mxu3 }
 0x74a   : > { %v2298_v49 = vadd.f32 %v2297_v55, %v1918_v38  ;;  %v2340_v62 = vadd.f32 %v2339_v56, %v1921_v44  ;;  %v2522_v38 = vmax.f32 %v2424_v12, 0.0  ;;  %v5148_v44 = vld [vmem:[%s5495_s28 + $0x338] sm:$0xff] }
 0x74b   : > { %v5120_v56 = vld [vmem:[%s5495_s28 + $0x258] sm:$0xff] }
 0x74c   : > { %v2513_v5 = vmax.f32 %v2298_v49, 0.0  ;;  %v2516_v2 = vmax.f32 %v2340_v62, 0.0  ;;  %v5163_v49 = vld [vmem:[%s5495_s28 + $0x3b0] sm:$0xff] }
 0x74d   : > { %3687 = vmatpush.bf16.msrb.mxu3 %v5113_v58  ;;  %3715 = vmatpush.bf16.msrb.mxu1 %v5129_v59  ;;  %v5140_v58 = vld [vmem:[%s5495_s28 + $0x2f8] sm:$0xff]  ;;  %v2538_v59 = vpack.c.bf16 %v2522_v38, %v2506_v52  ;;  %v5158_v38 = vld [vmem:[%s5495_s28 + $0x388] sm:$0xff]  ;;  %v5153_v52 = vld [vmem:[%s5495_s28 + $0x360] sm:$0xff] }
 0x74e   : > { %v2529_v54 = vpack.c.bf16 %v2513_v5, %v2497_v11  ;;  %v2532_v63 = vpack.c.bf16 %v2516_v2, %v2500_v8  ;;  %v5139_v11 = vld [vmem:[%s5495_s28 + $0x2f0] sm:$0xff]  ;;  %v5146_v8 = vld [vmem:[%s5495_s28 + $0x328] sm:$0xff]  ;;  %v2409_v2 = vpop.f32.mrf.mxu0 }
 0x74f   : > { %v5162_v5 = vld [vmem:[%s5495_s28 + $0x3a8] sm:$0xff] }
 0x750   : > { %3594 = vmatmul.bf16.vlgmr.msrb.gmra.mxu0 %v2529_v54  ;;  %3636 = vmatmul.bf16.vlgmr.msra.gmra.mxu3 %v2532_v63  ;;  %v5118_v54 = vld [vmem:[%s5495_s28 + $0x248] sm:$0xff] }
 0x751   : > { %3664 = vmatmul.bf16.vlgmr.msra.gmra.mxu1 %v2534_v16  ;;  %3688 = vmatpush.bf16.msrb.mxu3 %v5112_v57  ;;  %v2323_v3 = vpop.f32.mrf.mxu2  ;;  %v2393_v4 = vpop.f32.mrf.mxu3  ;;  %v1926_v57 = vperm.slane %v6150_v42, 1  ;;  %v5138_v63 = vld [vmem:[%s5495_s28 + $0x2e8] sm:$0xff]  ;;  %v5145_v16 = vld [vmem:[%s5495_s28 + $0x320] sm:$0xff] }
 0x752   : > { %3698 = vmatpush.bf16.msrb.mxu0 %v5124_v51  ;;  %3716 = vmatpush.bf16.msrb.mxu1 %v5128_v48  ;;  %v2324_v28 = vadd.f32 %v2323_v3, %v1920_v18  ;;  %v2394_v14 = vadd.f32 %v2393_v4, %v1925_v47  ;;  %v2477_v3 = vpop.f32.mrf.mxu1 }
 0x753   : > { %v2410_v51 = vadd.f32 %v2409_v2, %v1926_v57  ;;  %v2408_v9 = vadd.f32 %v2407_v35, %v1926_v57  ;;  %v5135_v35 = vld [vmem:[%s5495_s28 + $0x2d0] sm:$0xff]  ;;  %v5172_v2 = vld [vmem:[%s5495_s28 + $0x3f8] sm:$0xff] }
 0x754   : > { %v2499_v33 = vmax.f32 %v2324_v28, 0.0  ;;  %v2504_v45 = vmax.f32 %v2394_v14, 0.0  ;;  %v5143_v28 = vld [vmem:[%s5495_s28 + $0x310] sm:$0xff] }
 0x755   : > { %3689 = vmatpush.bf16.msrb.mxu3 %v5111_v7  ;;  %v2521_v17 = vmax.f32 %v2410_v51, 0.0  ;;  %v5155_v14 = vld [vmem:[%s5495_s28 + $0x370] sm:$0xff] }
 0x756   : > { %3699 = vmatpush.bf16.msrb.mxu0 %v5123_v10  ;;  %3717 = vmatpush.bf16.msrb.mxu1 %v5127_v13  ;;  %v5117_v13 = vld [vmem:[%s5495_s28 + $0x240] sm:$0xff] }
 0x759   : > { %3690 = vmatpush.bf16.msrb.mxu3 %v5110_v20  ;;  %v2325_v29 = vpop.f32.mrf.mxu2  ;;  %v2395_v25 = vpop.f32.mrf.mxu3 }
 0x75a   : > { %3700 = vmatpush.bf16.msrb.mxu0 %v5122_v27  ;;  %3718 = vmatpush.bf16.msrb.mxu1 %v5126_v24  ;;  %v2326_v36 = vadd.f32 %v2325_v29, %v1920_v18  ;;  %v2396_v39 = vadd.f32 %v2395_v25, %v1925_v47  ;;  %v5144_v18 = vld [vmem:[%s5495_s28 + $0x318] sm:$0xff]  ;;  %v2505_v27 = vmax.f32 %v2408_v9, 0.0  ;;  %v5149_v9 = vld [vmem:[%s5495_s28 + $0x340] sm:$0xff] }
 0x75b   : > { %v5156_v47 = vld [vmem:[%s5495_s28 + $0x378] sm:$0xff] }
 0x75c   : > { %v2515_v46 = vmax.f32 %v2326_v36, 0.0  ;;  %v2520_v31 = vmax.f32 %v2396_v39, 0.0  ;;  %v2537_v12 = vpack.c.bf16 %v2521_v17, %v2505_v27  ;;  %v1931_v36 = vperm.slane %v6150_v42, 6  ;;  %v5142_v39 = vld [vmem:[%s5495_s28 + $0x308] sm:$0xff] }
 0x75d   : > { %3691 = vmatpush.bf16.msrb.mxu3 %v5109_v50  ;;  %v2479_v50 = vpop.f32.mrf.mxu1 }
 0x75e   : > { %v2531_v37 = vpack.c.bf16 %v2515_v46, %v2499_v33  ;;  %v2536_v55 = vpack.c.bf16 %v2520_v31, %v2504_v45  ;;  %3701 = vmatpush.bf16.msrb.mxu0 %v5121_v34  ;;  %3719 = vmatpush.bf16.msrb.mxu1 %v5125_v21  ;;  %v5154_v34 = vld [vmem:[%s5495_s28 + $0x368] sm:$0xff]  ;;  %v2463_v45 = vpop.f32.mrf.mxu0  ;;  %v2478_v46 = vadd.f32 %v2477_v3, %v1931_v36  ;;  %v5141_v31 = vld [vmem:[%s5495_s28 + $0x300] sm:$0xff] }
 0x75f   : > { %v5134_v33 = vld [vmem:[%s5495_s28 + $0x2c8] sm:$0xff] }
 0x760   : > { %3622 = vmatmul.bf16.vlgmr.msrb.gmra.mxu2 %v2531_v37  ;;  %3650 = vmatmul.bf16.vlgmr.msra.gmra.mxu0 %v2533_v53  ;;  %v5170_v3 = vld [vmem:[%s5495_s28 + $0x3e8] sm:$0xff] }
 0x761   : > { %3740 = vmatpush.bf16.msra.mxu3 %v5148_v44  ;;  %3720 = vmatmul.bf16.vlgmr.msrb.gmra.mxu1 %v2538_v59  ;;  %v2379_v62 = vpop.f32.mrf.mxu2  ;;  %v2449_v48 = vpop.f32.mrf.mxu3  ;;  %v2480_v44 = vadd.f32 %v2479_v50, %v1931_v36 }
 0x762   : > { %3768 = vmatpush.bf16.msra.mxu1 %v5164_v6  ;;  %3692 = vmatmul.bf16.vlgmr.msrb.gmra.mxu3 %v2536_v55  ;;  %v2380_v4 = vadd.f32 %v2379_v62, %v1924_v60  ;;  %v2450_v6 = vadd.f32 %v2449_v48, %v1929_v30  ;;  %v5157_v55 = vld [vmem:[%s5495_s28 + $0x380] sm:$0xff]  ;;  %v2510_v62 = vmax.f32 %v2478_v46, 0.0  ;;  %v1930_v48 = vperm.slane %v6150_v42, 5 }
 0x763   : > { %3702 = vmatpush.bf16.msrb.mxu0 %v5120_v56  ;;  %3726 = vmatpush.bf16.msrb.mxu2 %v5140_v58  ;;  %v2526_v56 = vmax.f32 %v2480_v44, 0.0 }
 0x764   : > { %v2503_v19 = vmax.f32 %v2380_v4, 0.0  ;;  %v2508_v59 = vmax.f32 %v2450_v6, 0.0  ;;  %v2464_v4 = vadd.f32 %v2463_v45, %v1930_v48 }
 0x765   : > { %3741 = vmatpush.bf16.msra.mxu3 %v5147_v61 }
 0x766   : > { %3769 = vmatpush.bf16.msra.mxu1 %v5163_v49  ;;  %v5133_v49 = vld [vmem:[%s5495_s28 + $0x2c0] sm:$0xff]  ;;  %v2465_v51 = vpop.f32.mrf.mxu0 }
 0x767   : > { %3703 = vmatpush.bf16.msrb.mxu0 %v5119_v0  ;;  %3727 = vmatpush.bf16.msrb.mxu2 %v5139_v11  ;;  %v5152_v0 = vld [vmem:[%s5495_s28 + $0x358] sm:$0xff] }
 0x769   : > { %3742 = vmatpush.bf16.msra.mxu3 %v5146_v8  ;;  %v2381_v7 = vpop.f32.mrf.mxu2  ;;  %v2451_v29 = vpop.f32.mrf.mxu3 }
 0x76a   : > { %3770 = vmatpush.bf16.msra.mxu1 %v5162_v5  ;;  %v2382_v10 = vadd.f32 %v2381_v7, %v1924_v60  ;;  %v2452_v21 = vadd.f32 %v2451_v29, %v1929_v30  ;;  %v2542_v60 = vpack.c.bf16 %v2526_v56, %v2510_v62 }
 0x76b   : > { %3704 = vmatpush.bf16.msrb.mxu0 %v5118_v54  ;;  %3728 = vmatpush.bf16.msrb.mxu2 %v5138_v63  ;;  %v5151_v54 = vld [vmem:[%s5495_s28 + $0x350] sm:$0xff] }
 0x76c   : > { %v2519_v20 = vmax.f32 %v2382_v10, 0.0  ;;  %v2524_v53 = vmax.f32 %v2452_v21, 0.0  ;;  %v5171_v63 = vld [vmem:[%s5495_s28 + $0x3f0] sm:$0xff] }
 0x76d   : > { %3743 = vmatpush.bf16.msra.mxu3 %v5145_v16  ;;  %v5150_v16 = vld [vmem:[%s5495_s28 + $0x348] sm:$0xff] }
 0x76e   : > { %3771 = vmatpush.bf16.msra.mxu1 %v5161_v1  ;;  %v2535_v24 = vpack.c.bf16 %v2519_v20, %v2503_v19  ;;  %v2540_v11 = vpack.c.bf16 %v2524_v53, %v2508_v59  ;;  %v2466_v1 = vadd.f32 %v2465_v51, %v1930_v48  ;;  %v1932_v20 = vperm.slane %v6150_v42, 7  ;;  %v5197_v42 = vld [vmem:[%s6367_s1] ss:$0 sm:$0xff] }
 0x76f   : > { %3705 = vmatpush.bf16.msrb.mxu0 %v5117_v13  ;;  %3729 = vmatpush.bf16.msrb.mxu2 %v5137_v15  ;;  %v5169_v13 = vld [vmem:[%s5495_s28 + $0x3e0] sm:$0xff]  ;;  %v2509_v15 = vmax.f32 %v2464_v4, 0.0 }
 0x770   : > { %3678 = vmatmul.bf16.vlgmr.msra.gmra.mxu2 %v2535_v24  ;;  %v2525_v7 = vmax.f32 %v2466_v1, 0.0 }
 0x771   : > { %3744 = vmatpush.bf16.msra.mxu3 %v5144_v18  ;;  %v2435_v25 = vpop.f32.mrf.mxu2  ;;  %v5168_v18 = vld [vmem:[%s5495_s28 + $0x3d8] sm:$0xff] }
 0x772   : > { %3772 = vmatpush.bf16.msra.mxu1 %v5160_v23  ;;  %3706 = vmatmul.bf16.vlgmr.msrb.gmra.mxu0 %v2537_v12  ;;  %v2436_v37 = vadd.f32 %v2435_v25, %v1928_v40  ;;  %v2541_v17 = vpack.c.bf16 %v2525_v7, %v2509_v15  ;;  %v5166_v23 = vld [vmem:[%s5495_s28 + $0x3c8] sm:$0xff] }
 0x773   : > { %3754 = vmatpush.bf16.msra.mxu0 %v5156_v47  ;;  %3730 = vmatpush.bf16.msrb.mxu2 %v5136_v26  ;;  %v5167_v47 = vld [vmem:[%s5495_s28 + $0x3d0] sm:$0xff]  ;;  %v5165_v26 = vld [vmem:[%s5495_s28 + $0x3c0] sm:$0xff] }
 0x774   : > { %v2507_v8 = vmax.f32 %v2436_v37, 0.0 }
 0x775   : > { %3745 = vmatpush.bf16.msra.mxu3 %v5143_v28 }
 0x776   : > { %3773 = vmatpush.bf16.msra.mxu1 %v5159_v22 }
 0x777   : > { %3755 = vmatpush.bf16.msra.mxu0 %v5155_v14  ;;  %3731 = vmatpush.bf16.msrb.mxu2 %v5135_v35 }
 0x779   : > { %3746 = vmatpush.bf16.msra.mxu3 %v5142_v39  ;;  %v2437_v58 = vpop.f32.mrf.mxu2 }
 0x77a   : > { %3774 = vmatpush.bf16.msra.mxu1 %v5158_v38  ;;  %v2438_v61 = vadd.f32 %v2437_v58, %v1928_v40 }
 0x77b   : > { %3756 = vmatpush.bf16.msra.mxu0 %v5154_v34  ;;  %3732 = vmatpush.bf16.msrb.mxu2 %v5134_v33 }
 0x77c   : > { %v2523_v5 = vmax.f32 %v2438_v61, 0.0 }
 0x77d   : > { %3747 = vmatpush.bf16.msra.mxu3 %v5141_v31 }
 0x77e   : > { %3775 = vmatpush.bf16.msra.mxu1 %v5157_v55  ;;  %v2539_v57 = vpack.c.bf16 %v2523_v5, %v2507_v8 }
 0x77f   : > { %3757 = vmatpush.bf16.msra.mxu0 %v5153_v52  ;;  %3733 = vmatpush.bf16.msrb.mxu2 %v5133_v49 }
 0x780   : > { %3748 = vmatmul.bf16.vlgmr.msra.gmra.mxu3 %v2540_v11 }
 0x781   : > { %3776 = vmatmul.bf16.vlgmr.msra.gmra.mxu1 %v2542_v60  ;;  %v2491_v10 = vpop.f32.mrf.mxu2 }
 0x782   : > { %3734 = vmatmul.bf16.vlgmr.msrb.gmra.mxu2 %v2539_v57  ;;  %v2492_v24 = vadd.f32 %v2491_v10, %v1932_v20 }
 0x783   : > { %3758 = vmatpush.bf16.msra.mxu0 %v5152_v0  ;;  %3782 = vmatpush.bf16.msra.mxu2 %v5172_v2 }
 0x784   : > { %v2511_v28 = vmax.f32 %v2492_v24, 0.0 }
 0x787   : > { %3759 = vmatpush.bf16.msra.mxu0 %v5151_v54  ;;  %3783 = vmatpush.bf16.msra.mxu2 %v5171_v63 }
 0x789   : > { %v2493_v19 = vpop.f32.mrf.mxu2 }
 0x78a   : > { %v2494_v27 = vadd.f32 %v2493_v19, %v1932_v20 }
 0x78b   : > { %3760 = vmatpush.bf16.msra.mxu0 %v5150_v16  ;;  %3784 = vmatpush.bf16.msra.mxu2 %v5170_v3 }
 0x78c   : > { %v2527_v12 = vmax.f32 %v2494_v27, 0.0 }
 0x78e   : > { %v2543_v14 = vpack.c.bf16 %v2527_v12, %v2511_v28 }
 0x78f   : > { %3761 = vmatpush.bf16.msra.mxu0 %v5149_v9  ;;  %3785 = vmatpush.bf16.msra.mxu2 %v5169_v13 }
 0x792   : > { %3762 = vmatmul.bf16.vlgmr.msra.gmra.mxu0 %v2541_v17 }
 0x793   : > { %3786 = vmatpush.bf16.msra.mxu2 %v5168_v18 }
 0x797   : > { %3787 = vmatpush.bf16.msra.mxu2 %v5167_v47 }
 0x79b   : > { %3788 = vmatpush.bf16.msra.mxu2 %v5166_v23 }
 0x79f   : > { %3789 = vmatpush.bf16.msra.mxu2 %v5165_v26 }
 0x7a2   : > { %3790 = vmatmul.bf16.vlgmr.msra.gmra.mxu2 %v2543_v14 }
 0x7bd   : > { %v3609_v25 = vpop.f32.mrf.mxu1 }
 0x7c3   : > { %v3581_v22 = vpop.f32.mrf.mxu3 }
 0x7c4   : > { %v3582_v40 = vadd.f32 %v5197_v42, %v3581_v22 }
 0x7c5   : > { %v3611_v36 = vpop.f32.mrf.mxu1 }
 0x7cb   : > { %v3583_v50 = vpop.f32.mrf.mxu3 }
 0x7cc   : > { %v3584_v33 = vadd.f32 %v5197_v42, %v3583_v50 }
 0x7cd   : > { %v3595_v29 = vpop.f32.mrf.mxu0 }
 0x7ce   : > { %v3596_v38 = vadd.f32 %v3595_v29, %v3582_v40  ;;  %v3665_v44 = vpop.f32.mrf.mxu1 }
 0x7d0   : > { %v3610_v6 = vadd.f32 %v3609_v25, %v3596_v38 }
 0x7d3   : > { %v3637_v39 = vpop.f32.mrf.mxu3 }
 0x7d5   : > { %v3597_v30 = vpop.f32.mrf.mxu0 }
 0x7d6   : > { %v3598_v53 = vadd.f32 %v3597_v30, %v3584_v33  ;;  %v3667_v56 = vpop.f32.mrf.mxu1 }
 0x7d8   : > { %v3612_v55 = vadd.f32 %v3611_v36, %v3598_v53 }
 0x7db   : > { %v3639_v45 = vpop.f32.mrf.mxu3 }
 0x7dd   : > { %v3651_v34 = vpop.f32.mrf.mxu0 }
 0x7de   : > { %v3721_v2 = vpop.f32.mrf.mxu1 }
 0x7e3   : > { %v3623_v35 = vpop.f32.mrf.mxu2 }
 0x7e4   : > { %v3624_v46 = vadd.f32 %v3623_v35, %v3610_v6 }
 0x7e5   : > { %v3653_v31 = vpop.f32.mrf.mxu0  ;;  %v3693_v61 = vpop.f32.mrf.mxu3 }
 0x7e6   : > { %v3638_v37 = vadd.f32 %v3637_v39, %v3624_v46  ;;  %v3723_v4 = vpop.f32.mrf.mxu1 }
 0x7e8   : > { %v3652_v59 = vadd.f32 %v3651_v34, %v3638_v37 }
 0x7ea   : > { %v3666_v11 = vadd.f32 %v3665_v44, %v3652_v59 }
 0x7eb   : > { %v3625_v21 = vpop.f32.mrf.mxu2 }
 0x7ec   : > { %v3626_v58 = vadd.f32 %v3625_v21, %v3612_v55 }
 0x7ed   : > { %v3695_v57 = vpop.f32.mrf.mxu3 }
 0x7ee   : > { %v3640_v0 = vadd.f32 %v3639_v45, %v3626_v58 }
 0x7ef   : > { %v3707_v49 = vpop.f32.mrf.mxu0 }
 0x7f0   : > { %v3654_v5 = vadd.f32 %v3653_v31, %v3640_v0 }
 0x7f2   : > { %v3668_v54 = vadd.f32 %v3667_v56, %v3654_v5  ;;  %v5199_v5 = vld [vmem:[%s1020_s30] ss:$0 sm:$0xff]  ;;  %s6368_s30 = sld [smem:[#allocation27_spill]] (!%p4968_p5) }
 0x7f3   : > { %v3679_v52 = vpop.f32.mrf.mxu2 }
 0x7f4   : > { %v3680_v8 = vadd.f32 %v3679_v52, %v3666_v11  ;;  %v5198_v11 = vld [vmem:[%s1017_s20] ss:$0 sm:$0xff] }
 0x7f6   : > { %v3694_v60 = vadd.f32 %v3693_v61, %v3680_v8 }
 0x7f7   : > { %v3709_v63 = vpop.f32.mrf.mxu0 }
 0x7f8   : > { %v3708_v16 = vadd.f32 %v3707_v49, %v3694_v60 }
 0x7fa   : > { %v3722_v3 = vadd.f32 %v3721_v2, %v3708_v16 }
 0x7fb   : > { %v3681_v62 = vpop.f32.mrf.mxu2 }
 0x7fc   : > { %v3682_v48 = vadd.f32 %v3681_v62, %v3668_v54 }
 0x7fe   : > { %v3696_v1 = vadd.f32 %v3695_v57, %v3682_v48  ;;  %v3777_v19 = vpop.f32.mrf.mxu1 }
 0x800   : > { %v3710_v13 = vadd.f32 %v3709_v63, %v3696_v1 }
 0x802   : > { %v3724_v47 = vadd.f32 %v3723_v4, %v3710_v13 }
 0x803   : > { %v3749_v9 = vpop.f32.mrf.mxu3 }
 0x805   : > { %v3735_v51 = vpop.f32.mrf.mxu2 }
 0x806   : > { %v3736_v7 = vadd.f32 %v3735_v51, %v3722_v3  ;;  %v3779_v25 = vpop.f32.mrf.mxu1 }
 0x808   : > { %v3750_v17 = vadd.f32 %v3749_v9, %v3736_v7 }
 0x80b   : > { %v3751_v23 = vpop.f32.mrf.mxu3 }
 0x80d   : > { %v3737_v15 = vpop.f32.mrf.mxu2 }
 0x80e   : > { %v3738_v20 = vadd.f32 %v3737_v15, %v3724_v47 }
 0x80f   : > { %v3763_v10 = vpop.f32.mrf.mxu0 }
 0x810   : > { %v3764_v18 = vadd.f32 %v3763_v10, %v3750_v17  ;;  %v3752_v12 = vadd.f32 %v3751_v23, %v3738_v20 }
 0x812   : > { %v3778_v27 = vadd.f32 %v3777_v19, %v3764_v18 }
 0x817   : > { %v3765_v24 = vpop.f32.mrf.mxu0 }
 0x818   : > { %v3766_v14 = vadd.f32 %v3765_v24, %v3752_v12 }
 0x81a   : > { %v3780_v50 = vadd.f32 %v3779_v25, %v3766_v14 }
 0x825   : > { %v3791_v26 = vpop.f32.mrf.mxu2 }
 0x826   : > { %v3792_v28 = vadd.f32 %v3791_v26, %v3778_v27 }
 0x828   : > { %v3796_v22 = vadd.f32 %v3792_v28, %v5966_v41 }
 0x82a   : > { %v3800_v29 = vsel %vm1080_vm2, %v3796_v22, 0.0 }
 0x82b   : > { %3801 = vadd.xlane.f32.xlu0 %v3800_v29 }
 0x82d   : > { %v3793_v30 = vpop.f32.mrf.mxu2 }
 0x82e   : > { %v3794_v35 = vadd.f32 %v3793_v30, %v3780_v50 }
 0x830   : > { %v3797_v36 = vadd.f32 %v3794_v35, %v5968_v43 }
 0x832   : > { %v3803_v42 = vsel %vm1080_vm2, %v3797_v36, 0.0 }
 0x833   : > { %3804 = vadd.xlane.f32.xlu1 %v3803_v42 }
 0x89e   : > { %v3802_v39 = vpop.xlane.xlu0 %3801 }
 0x89f   : > { %v3806_v34 = vmul.f32 %v3802_v39, %v5866_v32 }
 0x8a1   : > { %v3808_v21 = vsub.f32 %v3796_v22, %v3806_v34 }
 0x8a3   : > { %v3810_v40 = vmul.f32 %v3808_v21, %v3808_v21 }
 0x8a5   : > { %v3812_v38 = vsel %vm1080_vm2, %v3810_v40, 0.0 }
 0x8a6   : > { %v3805_v41 = vpop.xlane.xlu1 %3804  ;;  %3813 = vadd.xlane.f32.xlu2 %v3812_v38 }
 0x8a7   : > { %v3807_v44 = vmul.f32 %v3805_v41, %v5866_v32 }
 0x8a9   : > { %v3809_v6 = vsub.f32 %v3797_v36, %v3807_v44 }
 0x8ab   : > { %v3811_v33 = vmul.f32 %v3809_v6, %v3809_v6 }
 0x8ad   : > { %v3815_v45 = vsel %vm1080_vm2, %v3811_v33, 0.0 }
 0x8ae   : > { %3816 = vadd.xlane.f32.xlu0 %v3815_v45 }
 0x919   : > { %v3814_v43 = vpop.xlane.xlu2 %3813 }
 0x91a   : > { %v3818_v46 = vmul.f32 %v3814_v43, %v5866_v32 }
 0x91c   : > { %v3820_v31 = vadd.f32 1e-05, %v3818_v46 }
 0x91e   : > { %5246 = vrsqrt.f32 %v3820_v31  ;;  %vm3828_vm11 = vweird.f32 %v3820_v31 }
 0x921   : > { %v3817_v52 = vpop.xlane.xlu0 %3816 }
 0x922   : > { %v3819_v53 = vmul.f32 %v3817_v52, %v5866_v32 }
 0x924   : > { %v5247_v37 = vpop.eup %5246  ;;  %v3821_v55 = vadd.f32 1e-05, %v3819_v53 }
 0x925   : > { %v3823_v56 = vmul.f32 %v5247_v37, %v3820_v31  ;;  %vm3829_vm10 = vweird.f32 %v5247_v37 }
 0x926   : > { %5248 = vrsqrt.f32 %v3821_v55  ;;  %vm3830_vm12 = vmor %vm3828_vm11, %vm3829_vm10  ;;  %vm3838_vm14 = vweird.f32 %v3821_v55 }
 0x927   : > { %v3824_v58 = vmul.f32 %v5247_v37, %v3823_v56 }
 0x929   : > { %v3825_v59 = vmul.f32 0.5, %v3824_v58 }
 0x92b   : > { %v3826_v61 = vsub.f32 1.5, %v3825_v59 }
 0x92c   : > { %v5249_v49 = vpop.eup %5248 }
 0x92d   : > { %v3827_v62 = vmul.f32 %v5247_v37, %v3826_v61  ;;  %v3833_v0 = vmul.f32 %v5249_v49, %v3821_v55  ;;  %vm3839_vm13 = vweird.f32 %v5249_v49 }
 0x92e   : > { %vm3840_vm15 = vmor %vm3838_vm14, %vm3839_vm13 }
 0x92f   : > { %v3831_v32 = vsel %vm3830_vm12, %v5247_v37, %v3827_v62  ;;  %v3834_v8 = vmul.f32 %v5249_v49, %v3833_v0 }
 0x930   : > { %v3842_v2 = vmul.f32 %v3831_v32, %v3808_v21 }
 0x931   : > { %v3835_v60 = vmul.f32 0.5, %v3834_v8 }
 0x932   : > { %v3847_v57 = vmul.f32 %v5198_v11, %v3842_v2 }
 0x933   : > { %v3836_v54 = vsub.f32 1.5, %v3835_v60 }
 0x934   : > { %v3852_v63 = vadd.f32 %v5199_v5, %v3847_v57 }
 0x935   : > { %v3837_v51 = vmul.f32 %v5249_v49, %v3836_v54 }
 0x936   : > { %3854 = vst.msk [vmem:[#allocation2] sm:$0xff] %vm1080_vm2, %v3852_v63 }
 0x937   : > { %v3841_v48 = vsel %vm3840_vm15, %v5249_v49, %v3837_v51 }
 0x938   : > { %v3843_v16 = vmul.f32 %v3841_v48, %v3809_v6 }
 0x93a   : > { %v3848_v1 = vmul.f32 %v5198_v11, %v3843_v16  ;;  %3859 = sbr.rel (%p4968_p5) target bundleno = 2625 (0xa41), region = 132 }
 0x93c   : > { %v3853_v3 = vadd.f32 %v5199_v5, %v3848_v1 }
 0x93e   : > { %3855 = vst.msk [vmem:[#allocation2 + $0x8] sm:$0xff] %vm1080_vm2, %v3853_v3 }
 0x93f   : > { %3878 = vmatpush.msra.mxu0 %v3853_v3  ;;  %v3860_v4 = vld [vmem:[%s6368_s30] sm:$0x3]  ;;  %v3891_v9 = vld [vmem:[%s6369_s26 + $0x38] sm:$0xff]  ;;  %v3890_v7 = vld [vmem:[%s6369_s26 + $0x30] sm:$0xff] }
 0x940   : > { %3907 = vmatpush.msra.mxu1 %v3891_v9  ;;  %v3889_v10 = vld [vmem:[%s6369_s26 + $0x28] sm:$0xff]  ;;  %v3888_v13 = vld [vmem:[%s6369_s26 + $0x20] sm:$0xff]  ;;  %v3887_v15 = vld [vmem:[%s6369_s26 + $0x18] sm:$0xff] }
 0x941   : > { %3879 = vmatpush.msra.mxu0 %v3852_v63  ;;  %v3886_v17 = vld [vmem:[%s6369_s26 + $0x10] sm:$0xff]  ;;  %v3885_v18 = vld [vmem:[%s6369_s26 + $0x8] sm:$0xff]  ;;  %v3884_v47 = vld [vmem:[%s6369_s26] sm:$0xff] }
 0x942   : > { %4969 = vmatmul.msk.f32.vlgmr.msra.gmra.mxu0 %vm1202_vm3, %v3860_v4  ;;  %3908 = vmatpush.msra.mxu1 %v3890_v7  ;;  %v5250_v20 = vld [vmem:[%s6370_s6] ss:$0 sm:$0xff]  ;;  %vm3919_vm3 = vcmask 41984  }
 0x944   : > { %3909 = vmatpush.msra.mxu1 %v3889_v10 }
 0x946   : > { %3910 = vmatpush.msra.mxu1 %v3888_v13 }
 0x948   : > { %3911 = vmatpush.msra.mxu1 %v3887_v15 }
 0x94a   : > { %3912 = vmatpush.msra.mxu1 %v3886_v17 }
 0x94c   : > { %3913 = vmatpush.msra.mxu1 %v3885_v18 }
 0x94e   : > { %3914 = vmatpush.msra.mxu1 %v3884_v47 }
 0x9bf   : > { %v3881_v19 = vpop.f32.mrf.mxu0 }
 0x9c0   : > { %4970 = vmatmul.msk.f32.vlgmr.msra.gmra.mxu1 %vm1080_vm2, %v3881_v19 }
 0xa3d   : > { %v3916_v23 = vpop.f32.mrf.mxu1 }
 0xa3e   : > { %v3917_v27 = vadd.f32 %v5250_v20, %v3916_v23 }
 0xa40   : > { %3920 = vst.msk [vmem:[#allocation3] sm:$0x3] %vm3919_vm3, %v3917_v27 }
 0xa41 PF: > { %p5178_p6 = scmp.eq.s32.totalorder %s5434_s3, 3  ;;  %s5292_s19 = smov [#allocation3]  }
 0xa42   : > { %s3927_s8 = sshll.u32 %s5292_s19, 4  ;;  %s6371_s9 = sld [smem:[#allocation28_spill]]  ;;  %s3928_s8 = int_to_ptr.vmem [resolvable:$true] %s3927_s8 }
 0xa48   : > { %s3929_s1 = sshll.u32 %s6371_s9, 4  ;;  %s3930_s1 = int_to_ptr.hbm [resolvable:$true] %s3929_s1 }
 0xa49   : > { %5175 = dma.vmem_to_hbm [thread:$0]  (%p5178_p6), %s3928_s8, 32, %s3930_s1, [#allocation4]  }
 0xa4a   : > { %5284 = dma.done.wait (%p5178_p6), [#allocation4], 32  }
 0xa4b   : > { %5286 = vsyncadd (%p5178_p6), [#allocation4], 4294967264 }
 0xa4c PF: > { %s6372_s28 = sld [smem:[#allocation6_spill]] }
 0xa52   : > { %s37_s27 = sadd.s32 1, %s6372_s28  }
 0xa53   : > { %p34_p7 = scmp.ge.s32.totalorder %s37_s27, 6  }
 0xa55   :  { %36 = sbr.rel (!%p34_p7) target bundleno = 21 (0x15), region = 204 }
 0xa5a   :  { %3943 = vsyncpa [#allocation4], 1 }
 0xa5b   :  { %3945 = vsyncpa [#allocation4 + $0x1], 1 }

</bundles_post_ra>
